<compile_context>
chip_gen: v7x
topology: tpu7x:2x2x1
jax: 0.10.0
libtpu: 0.0.40
codegen_flags: <defaults>
</compile_context>

<pallas_src>
import functools

import jax
import jax.numpy as jnp
from jax.experimental import pallas as pl
from jax.experimental.pallas import tpu as pltpu


def _round_up(x, m):
    return ((x + m - 1) // m) * m


def _max_batch_tile():
    # v7x: 64 MiB VMEM per TC -> cap the batch tile at 1024.
    # v5e/v6e: 128 MiB VMEM -> 2048 is comfortable.
    try:
        vmem = pltpu.get_tpu_info().vmem_capacity_bytes
    except Exception:
        return 1024
    return 2048 if vmem >= 128 * 1024 * 1024 else 1024


def _pick_batch_tiling(B):
    max_tb = _max_batch_tile()
    Bpad = _round_up(max(B, 8), 8)          # sublane-aligned
    if Bpad <= max_tb:
        return Bpad, Bpad                   # single tile covers (padded) batch
    TB = max_tb                             # multiple of 128 -> MXU-aligned M
    return TB, _round_up(Bpad, TB)


# ----------------------------- Pallas kernel --------------------------------
def _encoder_kernel(*refs, stochastic, quantize, lo, alpha, L):
    if stochastic:
        (x_ref, w1_ref, b1_ref, w2_ref, b2_ref, w3_ref, b3_ref,
         u_ref, o_ref) = refs
    else:
        (x_ref, w1_ref, b1_ref, w2_ref, b2_ref, w3_ref, b3_ref,
         o_ref) = refs
        u_ref = None

    # Linear(en_in -> 1024) + ReLU    (bf16 operands, f32 MXU accumulation)
    h1 = jnp.dot(x_ref[...], w1_ref[...], preferred_element_type=jnp.float32)
    h1 = jnp.maximum(h1 + b1_ref[...].astype(jnp.float32), 0.0)

    # Linear(1024 -> 512) + ReLU
    h2 = jnp.dot(h1.astype(jnp.bfloat16), w2_ref[...],
                 preferred_element_type=jnp.float32)
    h2 = jnp.maximum(h2 + b2_ref[...].astype(jnp.float32), 0.0)

    # Linear(512 -> latent [padded to 128 lanes]) + ReLU
    z = jnp.dot(h2.astype(jnp.bfloat16), w3_ref[...],
                preferred_element_type=jnp.float32)
    z = jnp.maximum(z + b3_ref[...].astype(jnp.float32), 0.0)

    if stochastic:
        z = z + u_ref[...]

    if quantize:
        # centers = linspace(lo, hi, L)  ->  closed-form uniform quantizer.
        # ceil(t - 0.5) rounds exact halves DOWN, matching the first-min-wins
        # tie-break of the original nearest-center search.
        t = (z - lo) * (1.0 / alpha)
        idx = jnp.clip(jnp.ceil(t - 0.5), 0.0, float(L - 1))
        z = lo + idx * alpha

    o_ref[...] = z.astype(o_ref.dtype)


# ------------------------------ Wrapper --------------------------------------
def encoder_mnist_forward(x, u, y, params, cfg):
    """Mirrors EncoderMNIST.forward(x, u, y)."""
    B = x.shape[0]
    xf = x.reshape(B, cfg["input_size"]).astype(jnp.float32)

    if cfg["use_si"]:
        y1h = jax.nn.one_hot(y, cfg["n_class"], dtype=jnp.float32)
        xa = y1h if cfg["only_si"] else jnp.concatenate([xf, y1h], axis=1)
    else:
        xa = xf

    w1, b1 = params["w1"], params["b1"]
    w2, b2 = params["w2"], params["b2"]
    w3, b3 = params["w3"], params["b3"]

    en_in = w1.shape[0]
    latent = w3.shape[1]
    stochastic = bool(cfg["stochastic"])
    quantize = bool(cfg["quantize"]) and not cfg["only_si"]

    # Lane / sublane friendly padded sizes.
    Kp = _round_up(en_in, 128)          # contraction dim of first matmul
    Np = _round_up(latent, 128)         # lane-dense output width
    TB, Bp = _pick_batch_tiling(B)

    # Pad + cast operands once in the wrapper (zeros are exact under matmul).
    xa_p = jnp.zeros((Bp, Kp), jnp.bfloat16).at[:B, :en_in].set(
        xa.astype(jnp.bfloat16))
    w1p = jnp.zeros((Kp, 1024), jnp.bfloat16).at[:en_in, :].set(
        w1.astype(jnp.bfloat16))
    b1p = b1.astype(jnp.bfloat16).reshape(1, 1024)
    w2p = w2.astype(jnp.bfloat16)
    b2p = b2.astype(jnp.bfloat16).reshape(1, 512)
    w3p = jnp.zeros((512, Np), jnp.bfloat16).at[:, :latent].set(
        w3.astype(jnp.bfloat16))
    b3p = jnp.zeros((1, Np), jnp.bfloat16).at[:, :latent].set(
        b3.astype(jnp.bfloat16).reshape(1, latent))

    lo, hi = float(cfg["limits"][0]), float(cfg["limits"][1])
    L = int(cfg["L"])
    alpha = (hi - lo) / (L - 1)

    resident = lambda i: (0, 0)     # weights: same block for every batch tile
    streamed = lambda i: (i, 0)     # activations: one batch tile per grid step

    in_specs = [
        pl.BlockSpec((TB, Kp), streamed),        # x
        pl.BlockSpec((Kp, 1024), resident),      # w1
        pl.BlockSpec((1, 1024), resident),       # b1
        pl.BlockSpec((1024, 512), resident),     # w2
        pl.BlockSpec((1, 512), resident),        # b2
        pl.BlockSpec((512, Np), resident),       # w3
        pl.BlockSpec((1, Np), resident),         # b3
    ]
    args = [xa_p, w1p, b1p, w2p, b2p, w3p, b3p]

    if stochastic:
        u_p = jnp.zeros((Bp, Np), jnp.float32).at[:B, :latent].set(
            u.astype(jnp.float32))
        in_specs.append(pl.BlockSpec((TB, Np), streamed))
        args.append(u_p)

    flops = 2 * Bp * (Kp * 1024 + 1024 * 512 + 512 * Np)
    bytes_accessed = int(
        sum(int(a.size) * a.dtype.itemsize for a in args) + Bp * Np * 4)

    kernel = functools.partial(
        _encoder_kernel, stochastic=stochastic, quantize=quantize,
        lo=lo, alpha=alpha, L=L)

    out = pl.pallas_call(
        kernel,
        out_shape=jax.ShapeDtypeStruct((Bp, Np), jnp.float32),
        grid=(Bp // TB,),
        in_specs=in_specs,
        out_specs=pl.BlockSpec((TB, Np), streamed),
        compiler_params=pltpu.CompilerParams(
            dimension_semantics=("parallel",),
            vmem_limit_bytes=(96 * 1024 * 1024 if TB > 1024 else None)),
        cost_estimate=pl.CostEstimate(
            flops=flops, transcendentals=0, bytes_accessed=bytes_accessed),
    )(*args)

    # Drop batch / lane padding.
    return out[:B, :latent]


# --------------------------- Param construction ------------------------------
def make_params(key, en_in_size, latent_dim):
    ks = jax.random.split(key, 6)
    scale = 0.05
    w1 = scale * jax.random.normal(ks[0], (en_in_size, 1024), jnp.float32)
    b1 = scale * jax.random.normal(ks[1], (1024,), jnp.float32)
    w2 = scale * jax.random.normal(ks[2], (1024, 512), jnp.float32)
    b2 = scale * jax.random.normal(ks[3], (512,), jnp.float32)
    w3 = scale * jax.random.normal(ks[4], (512, latent_dim), jnp.float32)
    b3 = scale * jax.random.normal(ks[5], (latent_dim,), jnp.float32)
    # Quantization centers are linspace(limits) -> handled in closed form in
    # the kernel; no centers array is needed.
    return dict(w1=w1, b1=b1, w2=w2, b2=b2, w3=w3, b3=b3)


# --------------------------------- Main ---------------------------------------
if __name__ == "__main__":
    cfg = dict(
        input_size=64,        # 1x8x8 image flattened
        n_class=10,
        latent_dim=32,
        use_si=True,
        only_si=False,
        quantize=True,
        stochastic=True,
        L=4,
        limits=(-1.0, 1.0),
    )
    en_in = (cfg["n_class"] if cfg["only_si"]
             else (cfg["input_size"] + cfg["n_class"] if cfg["use_si"]
                   else cfg["input_size"]))

    key = jax.random.PRNGKey(0)
    kx, ku, ky, kp = jax.random.split(key, 4)

    B = 2
    x = jax.random.normal(kx, (B, 1, 8, 8), jnp.float32)       # NCHW image
    alpha = (cfg["limits"][1] - cfg["limits"][0]) / (cfg["L"] - 1)
    u = jax.random.uniform(ku, (B, cfg["latent_dim"]), jnp.float32,
                           minval=-alpha / 2, maxval=alpha / 2)
    y = jax.random.randint(ky, (B,), 0, cfg["n_class"])

    params = make_params(kp, en_in, cfg["latent_dim"])

    out = jax.block_until_ready(encoder_mnist_forward(x, u, y, params, cfg))
    assert out.shape == (B, cfg["latent_dim"])
    assert bool(jnp.all(jnp.isfinite(out)))
    # Quantized outputs must lie on the uniform center grid linspace(lo, hi, L).
    t = (out - cfg["limits"][0]) / alpha
    assert bool(jnp.all(jnp.abs(t - jnp.round(t)) < 1e-4))
    print("KERNEL_OK")
</pallas_src>

<mosaic_0001>
module attributes {stable_mosaic.version = 11 : i64} {
  func.func @_encoder_kernel(%arg0: i32, %arg1: memref<8x128xbf16, #tpu.memory_space<vmem>>, %arg2: memref<128x1024xbf16, #tpu.memory_space<vmem>>, %arg3: memref<1x1024xbf16, #tpu.memory_space<vmem>>, %arg4: memref<1024x512xbf16, #tpu.memory_space<vmem>>, %arg5: memref<1x512xbf16, #tpu.memory_space<vmem>>, %arg6: memref<512x128xbf16, #tpu.memory_space<vmem>>, %arg7: memref<1x128xbf16, #tpu.memory_space<vmem>>, %arg8: memref<8x128xf32, #tpu.memory_space<vmem>>, %arg9: memref<8x128xf32, #tpu.memory_space<vmem>>) attributes {dimension_semantics = [#tpu.dimension_semantics<parallel>], iteration_bounds = array<i64: 1>, scalar_prefetch = 0 : i64, scratch_operands = 0 : i64, tpu.core_type = #tpu.core_type<tc>, window_params = [{transform_indices = @transform_0, window_bounds = array<i64: 8, 128>}, {pipeline_mode = #tpu.pipeline_mode<synchronous>, transform_indices = @transform_1, window_bounds = array<i64: 128, 1024>}, {pipeline_mode = #tpu.pipeline_mode<synchronous>, transform_indices = @transform_2, window_bounds = array<i64: 1, 1024>}, {pipeline_mode = #tpu.pipeline_mode<synchronous>, transform_indices = @transform_3, window_bounds = array<i64: 1024, 512>}, {pipeline_mode = #tpu.pipeline_mode<synchronous>, transform_indices = @transform_4, window_bounds = array<i64: 1, 512>}, {pipeline_mode = #tpu.pipeline_mode<synchronous>, transform_indices = @transform_5, window_bounds = array<i64: 512, 128>}, {pipeline_mode = #tpu.pipeline_mode<synchronous>, transform_indices = @transform_6, window_bounds = array<i64: 1, 128>}, {transform_indices = @transform_7, window_bounds = array<i64: 8, 128>}, {transform_indices = @transform_8, window_bounds = array<i64: 8, 128>}]} {
    %c0 = arith.constant 0 : index
    %c0_0 = arith.constant 0 : index
    %0 = vector.load %arg1[%c0, %c0_0] : memref<8x128xbf16, #tpu.memory_space<vmem>>, vector<8x128xbf16>
    %c0_1 = arith.constant 0 : index
    %c0_2 = arith.constant 0 : index
    %1 = vector.load %arg2[%c0_1, %c0_2] : memref<128x1024xbf16, #tpu.memory_space<vmem>>, vector<128x1024xbf16>
    %cst = arith.constant dense<0.000000e+00> : vector<8x1024xf32>
    %2 = tpu.matmul %0, %1, %cst {dimension_numbers = #tpu.dot_dimension_numbers<[1], [0], [0], [1], [0, 0, 1, 1], [], []>} : vector<8x128xbf16>, vector<128x1024xbf16>, vector<8x1024xf32> -> vector<8x1024xf32>
    %c0_3 = arith.constant 0 : index
    %c0_4 = arith.constant 0 : index
    %3 = vector.load %arg3[%c0_3, %c0_4] : memref<1x1024xbf16, #tpu.memory_space<vmem>>, vector<1x1024xbf16>
    %4 = arith.extf %3 : vector<1x1024xbf16> to vector<1x1024xf32>
    %5 = vector.broadcast %4 : vector<1x1024xf32> to vector<8x1024xf32>
    %6 = arith.addf %2, %5 : vector<8x1024xf32>
    %cst_5 = arith.constant 0.000000e+00 : f32
    %7 = vector.broadcast %cst_5 : f32 to vector<8x1024xf32>
    %8 = arith.maximumf %6, %7 : vector<8x1024xf32>
    %9 = arith.truncf %8 : vector<8x1024xf32> to vector<8x1024xbf16>
    %c0_6 = arith.constant 0 : index
    %c0_7 = arith.constant 0 : index
    %10 = vector.load %arg4[%c0_6, %c0_7] : memref<1024x512xbf16, #tpu.memory_space<vmem>>, vector<1024x512xbf16>
    %cst_8 = arith.constant dense<0.000000e+00> : vector<8x512xf32>
    %11 = tpu.matmul %9, %10, %cst_8 {dimension_numbers = #tpu.dot_dimension_numbers<[1], [0], [0], [1], [0, 0, 1, 1], [], []>} : vector<8x1024xbf16>, vector<1024x512xbf16>, vector<8x512xf32> -> vector<8x512xf32>
    %c0_9 = arith.constant 0 : index
    %c0_10 = arith.constant 0 : index
    %12 = vector.load %arg5[%c0_9, %c0_10] : memref<1x512xbf16, #tpu.memory_space<vmem>>, vector<1x512xbf16>
    %13 = arith.extf %12 : vector<1x512xbf16> to vector<1x512xf32>
    %14 = vector.broadcast %13 : vector<1x512xf32> to vector<8x512xf32>
    %15 = arith.addf %11, %14 : vector<8x512xf32>
    %cst_11 = arith.constant 0.000000e+00 : f32
    %16 = vector.broadcast %cst_11 : f32 to vector<8x512xf32>
    %17 = arith.maximumf %15, %16 : vector<8x512xf32>
    %18 = arith.truncf %17 : vector<8x512xf32> to vector<8x512xbf16>
    %c0_12 = arith.constant 0 : index
    %c0_13 = arith.constant 0 : index
    %19 = vector.load %arg6[%c0_12, %c0_13] : memref<512x128xbf16, #tpu.memory_space<vmem>>, vector<512x128xbf16>
    %cst_14 = arith.constant dense<0.000000e+00> : vector<8x128xf32>
    %20 = tpu.matmul %18, %19, %cst_14 {dimension_numbers = #tpu.dot_dimension_numbers<[1], [0], [0], [1], [0, 0, 1, 1], [], []>} : vector<8x512xbf16>, vector<512x128xbf16>, vector<8x128xf32> -> vector<8x128xf32>
    %c0_15 = arith.constant 0 : index
    %c0_16 = arith.constant 0 : index
    %21 = vector.load %arg7[%c0_15, %c0_16] : memref<1x128xbf16, #tpu.memory_space<vmem>>, vector<1x128xbf16>
    %22 = arith.extf %21 : vector<1x128xbf16> to vector<1x128xf32>
    %23 = vector.broadcast %22 : vector<1x128xf32> to vector<8x128xf32>
    %24 = arith.addf %20, %23 : vector<8x128xf32>
    %cst_17 = arith.constant 0.000000e+00 : f32
    %25 = vector.broadcast %cst_17 : f32 to vector<8x128xf32>
    %26 = arith.maximumf %24, %25 : vector<8x128xf32>
    %c0_18 = arith.constant 0 : index
    %c0_19 = arith.constant 0 : index
    %27 = vector.load %arg8[%c0_18, %c0_19] : memref<8x128xf32, #tpu.memory_space<vmem>>, vector<8x128xf32>
    %28 = arith.addf %26, %27 : vector<8x128xf32>
    %cst_20 = arith.constant -1.000000e+00 : f32
    %29 = vector.broadcast %cst_20 : f32 to vector<8x128xf32>
    %30 = arith.subf %28, %29 : vector<8x128xf32>
    %cst_21 = arith.constant 1.500000e+00 : f32
    %31 = vector.broadcast %cst_21 : f32 to vector<8x128xf32>
    %32 = arith.mulf %30, %31 : vector<8x128xf32>
    %cst_22 = arith.constant 5.000000e-01 : f32
    %33 = vector.broadcast %cst_22 : f32 to vector<8x128xf32>
    %34 = arith.subf %32, %33 : vector<8x128xf32>
    %35 = math.ceil %34 : vector<8x128xf32>
    %cst_23 = arith.constant 0.000000e+00 : f32
    %cst_24 = arith.constant 3.000000e+00 : f32
    %36 = vector.broadcast %cst_23 : f32 to vector<8x128xf32>
    %37 = arith.maximumf %36, %35 : vector<8x128xf32>
    %38 = vector.broadcast %cst_24 : f32 to vector<8x128xf32>
    %39 = arith.minimumf %38, %37 : vector<8x128xf32>
    %cst_25 = arith.constant 0.666666686 : f32
    %40 = vector.broadcast %cst_25 : f32 to vector<8x128xf32>
    %41 = arith.mulf %39, %40 : vector<8x128xf32>
    %cst_26 = arith.constant -1.000000e+00 : f32
    %42 = vector.broadcast %cst_26 : f32 to vector<8x128xf32>
    %43 = arith.addf %42, %41 : vector<8x128xf32>
    %c0_27 = arith.constant 0 : index
    %c0_28 = arith.constant 0 : index
    %44 = vector.load %arg9[%c0_27, %c0_28] : memref<8x128xf32, #tpu.memory_space<vmem>>, vector<8x128xf32>
    tpu.vector_store %arg9[%c0_27, %c0_28], %43 {strides = array<i32>} : memref<8x128xf32, #tpu.memory_space<vmem>>, vector<8x128xf32>,
    return
  }
  func.func @transform_0(%arg0: i32) -> (i32, i32) {
    %c0_i32 = arith.constant 0 : i32
    %c0_i32_0 = arith.constant 0 : i32
    return %arg0, %c0_i32 : i32, i32
  }
  func.func @transform_1(%arg0: i32) -> (i32, i32) {
    %c0_i32 = arith.constant 0 : i32
    %c0_i32_0 = arith.constant 0 : i32
    %c0_i32_1 = arith.constant 0 : i32
    return %c0_i32, %c0_i32_0 : i32, i32
  }
  func.func @transform_2(%arg0: i32) -> (i32, i32) {
    %c0_i32 = arith.constant 0 : i32
    %c0_i32_0 = arith.constant 0 : i32
    %c0_i32_1 = arith.constant 0 : i32
    return %c0_i32, %c0_i32_0 : i32, i32
  }
  func.func @transform_3(%arg0: i32) -> (i32, i32) {
    %c0_i32 = arith.constant 0 : i32
    %c0_i32_0 = arith.constant 0 : i32
    %c0_i32_1 = arith.constant 0 : i32
    return %c0_i32, %c0_i32_0 : i32, i32
  }
  func.func @transform_4(%arg0: i32) -> (i32, i32) {
    %c0_i32 = arith.constant 0 : i32
    %c0_i32_0 = arith.constant 0 : i32
    %c0_i32_1 = arith.constant 0 : i32
    return %c0_i32, %c0_i32_0 : i32, i32
  }
  func.func @transform_5(%arg0: i32) -> (i32, i32) {
    %c0_i32 = arith.constant 0 : i32
    %c0_i32_0 = arith.constant 0 : i32
    %c0_i32_1 = arith.constant 0 : i32
    return %c0_i32, %c0_i32_0 : i32, i32
  }
  func.func @transform_6(%arg0: i32) -> (i32, i32) {
    %c0_i32 = arith.constant 0 : i32
    %c0_i32_0 = arith.constant 0 : i32
    %c0_i32_1 = arith.constant 0 : i32
    return %c0_i32, %c0_i32_0 : i32, i32
  }
  func.func @transform_7(%arg0: i32) -> (i32, i32) {
    %c0_i32 = arith.constant 0 : i32
    %c0_i32_0 = arith.constant 0 : i32
    return %arg0, %c0_i32 : i32, i32
  }
  func.func @transform_8(%arg0: i32) -> (i32, i32) {
    %c0_i32 = arith.constant 0 : i32
    %c0_i32_0 = arith.constant 0 : i32
    return %arg0, %c0_i32 : i32, i32
  }
}

</mosaic_0001>

<bundles_post_ra>
// kernel: tpu_custom_call.1
= control target key start
LH: loop header
LB: loop body
LE: loop exit
PB: predicated region body
PF: predicated region fallthrough
CT: control target
= control target key end

     0   :  { %13 = vsyncpa [#allocation3], 0  ;;  %s4233_s0 = inlined_call_operand.hbm [shape: bf16[8,128], index: 0, kind: input, shape index: {}]   ;;  %s4234_s1 = inlined_call_operand.hbm [shape: bf16[128,1024], index: 1, kind: input, shape index: {}]   ;;  %s4235_s2 = inlined_call_operand.hbm [shape: bf16[1,1024], index: 2, kind: input, shape index: {}]   ;;  %s4236_s3 = inlined_call_operand.hbm [shape: bf16[1024,512], index: 3, kind: input, shape index: {}]   ;;  %s4237_s4 = inlined_call_operand.vmem [shape: bf16[1,512], index: 4, kind: input, shape index: {}]   ;;  %s4238_s5 = inlined_call_operand.hbm [shape: bf16[512,128], index: 5, kind: input, shape index: {}]   ;;  %s4239_s6 = inlined_call_operand.vmem [shape: bf16[1,128], index: 6, kind: input, shape index: {}]   ;;  %s4240_s7 = inlined_call_operand.vmem [shape: f32[8,128], index: 7, kind: input, shape index: {}]   ;;  %s4241_s8 = inlined_call_operand.hbm [shape: f32[8,128], index: 8, kind: output, shape index: {}]  }
   0x1   :  { %14 = vsyncpa [#allocation6], 0 }
   0x2   :  { %15 = vsyncpa [#allocation9], 0 }
   0x3   :  { %16 = vsyncpa [#allocation4], 0  ;;  %s4014_s27 = smov [#allocation5]   ;;  %s3874_s9 = scalar_lea.hbm %s4234_s1, 8192 }
   0x4   :  { %s32_s28 = sshll.u32 %s4014_s27, 4  ;;  %p3875_p0 = scmp.ne.s32.totalorder %s4234_s1, %s3874_s9  ;;  %s33_s28 = int_to_ptr.vmem [resolvable:$true] %s32_s28 }
   0x5   :  { %p3878_p1 = scmp.lt.u32.totalorder %s3874_s9, %s4234_s1 }
   0x7   :  { %p3880_p2 = pnand %p3878_p1, %p3875_p0 }
   0x9   :  { %3883 = shalt.err (!%p3880_p2)
}
   0xa   :  { %s3884_s14 = scalar_lea.vmem %s33_s28, 8192  ;;  %p3889_p4 = scmp.lt.s32.totalorder %s33_s28, %s33_s28 }
   0xb   :  { %p3885_p3 = scmp.ne.s32.totalorder %s33_s28, %s3884_s14  ;;  %p3890_p5 = scmp.lt.s32.totalorder %s3884_s14, %s3884_s14 }
   0xd   :  { %p3891_p6 = por %p3890_p5, %p3889_p4 }
   0xf   :  { %p3892_p7 = pnand %p3891_p6, %p3885_p3 }
  0x11   :  { %3895 = shalt.err (!%p3892_p7)
}
  0x12   :  { %s4015_s15 = smov 512   ;;  %s4016_s16 = smov 32  }
  0x13   :  { %38 = dma.hbm_to_vmem [thread:$0]  %s4234_s1, 8192, %s33_s28, [#allocation6], %s4015_s15, %s4015_s15, %s4016_s16  }
  0x14   :  { %s4017_s19 = smov [#allocation8]   ;;  %s3896_s23 = scalar_lea.hbm %s4236_s3, 32768 }
  0x15   :  { %s54_s20 = sshll.u32 %s4017_s19, 4  ;;  %p3897_p8 = scmp.ne.s32.totalorder %s4236_s3, %s3896_s23  ;;  %s55_s20 = int_to_ptr.vmem [resolvable:$true] %s54_s20 }
  0x16   :  { %p3900_p9 = scmp.lt.u32.totalorder %s3896_s23, %s4236_s3 }
  0x18   :  { %p3902_p10 = pnand %p3900_p9, %p3897_p8 }
  0x1a   :  { %3905 = shalt.err (!%p3902_p10)
}
  0x1b   :  { %s3906_s29 = scalar_lea.vmem %s55_s20, 32768  ;;  %p3911_p12 = scmp.lt.s32.totalorder %s55_s20, %s55_s20 }
  0x1c   :  { %p3907_p11 = scmp.ne.s32.totalorder %s55_s20, %s3906_s29  ;;  %p3912_p13 = scmp.lt.s32.totalorder %s3906_s29, %s3906_s29 }
  0x1e   :  { %p3913_p0 = por %p3912_p13, %p3911_p12 }
  0x20   :  { %p3914_p1 = pnand %p3913_p0, %p3907_p11 }
  0x22   :  { %3917 = shalt.err (!%p3914_p1)
}
  0x23   :  { %s4018_s1 = smov 256   ;;  %s4019_s28 = smov 16  }
  0x24   :  { %60 = dma.hbm_to_vmem [thread:$0]  %s4236_s3, 32768, %s55_s20, [#allocation9], %s4018_s1, %s4018_s1, %s4019_s28  }
  0x25   :  { %s4020_s10 = smov [#allocation2]   ;;  %s4021_s12 = smov [#allocation7]  }
  0x26   :  { %s23_s11 = sshll.u32 %s4020_s10, 4  ;;  %s45_s13 = sshll.u32 %s4021_s12, 4  ;;  %s24_s11 = int_to_ptr.vmem [resolvable:$true] %s23_s11  ;;  %s46_s13 = int_to_ptr.vmem [resolvable:$true] %s45_s13 }
  0x27   :  { %s3918_s16 = scalar_lea.hbm %s4233_s0, 64 }
  0x28   :  { %p3919_p2 = scmp.ne.s32.totalorder %s4233_s0, %s3918_s16  ;;  %p3922_p3 = scmp.lt.u32.totalorder %s3918_s16, %s4233_s0 }
  0x2a   :  { %p3924_p4 = pnand %p3922_p3, %p3919_p2 }
  0x2c   :  { %3927 = shalt.err (!%p3924_p4)
}
  0x2d   :  { %s3928_s3 = scalar_lea.vmem %s24_s11, 64  ;;  %p3933_p6 = scmp.lt.s32.totalorder %s24_s11, %s24_s11 }
  0x2e   :  { %p3929_p5 = scmp.ne.s32.totalorder %s24_s11, %s3928_s3  ;;  %p3934_p7 = scmp.lt.s32.totalorder %s3928_s3, %s3928_s3 }
  0x30   :  { %p3935_p8 = por %p3934_p7, %p3933_p6 }
  0x32   :  { %p3936_p9 = pnand %p3935_p8, %p3929_p5 }
  0x34   :  { %3939 = shalt.err (!%p3936_p9)
}
  0x35   :  { %26 = dma.hbm_to_vmem [thread:$0]  %s4233_s0, 64, %s24_s11, [#allocation3]  }
  0x36   :  { %s3940_s25 = scalar_lea.hbm %s4235_s2, 128 }
  0x37   :  { %p3941_p10 = scmp.ne.s32.totalorder %s4235_s2, %s3940_s25  ;;  %p3944_p11 = scmp.lt.u32.totalorder %s3940_s25, %s4235_s2 }
  0x39   :  { %p3946_p12 = pnand %p3944_p11, %p3941_p10 }
  0x3b   :  { %3949 = shalt.err (!%p3946_p12)
}
  0x3c   :  { %s3950_s28 = scalar_lea.vmem %s46_s13, 128  ;;  %p3955_p0 = scmp.lt.s32.totalorder %s46_s13, %s46_s13 }
  0x3d   :  { %p3951_p13 = scmp.ne.s32.totalorder %s46_s13, %s3950_s28  ;;  %p3956_p1 = scmp.lt.s32.totalorder %s3950_s28, %s3950_s28 }
  0x3f   :  { %p3957_p2 = por %p3956_p1, %p3955_p0 }
  0x41   :  { %p3958_p3 = pnand %p3957_p2, %p3951_p13 }
  0x43   :  { %3961 = shalt.err (!%p3958_p3)
}
  0x44   :  { %48 = dma.hbm_to_vmem [thread:$0]  %s4235_s2, 128, %s46_s13, [#allocation6]  }
  0x45   :  { %s4022_s9 = smov [#allocation10]   ;;  %s3962_s14 = scalar_lea.hbm %s4238_s5, 4096 }
  0x46   :  { %s68_s10 = sshll.u32 %s4022_s9, 4  ;;  %p3963_p4 = scmp.ne.s32.totalorder %s4238_s5, %s3962_s14  ;;  %s69_s10 = int_to_ptr.vmem [resolvable:$true] %s68_s10 }
  0x47   :  { %p3966_p5 = scmp.lt.u32.totalorder %s3962_s14, %s4238_s5 }
  0x49   :  { %p3968_p6 = pnand %p3966_p5, %p3963_p4 }
  0x4b   :  { %3971 = shalt.err (!%p3968_p6)
}
  0x4c   :  { %s3972_s19 = scalar_lea.vmem %s69_s10, 4096  ;;  %p3977_p8 = scmp.lt.s32.totalorder %s69_s10, %s69_s10 }
  0x4d   :  { %p3973_p7 = scmp.ne.s32.totalorder %s69_s10, %s3972_s19  ;;  %p3978_p9 = scmp.lt.s32.totalorder %s3972_s19, %s3972_s19 }
  0x4f   :  { %p3979_p10 = por %p3978_p9, %p3977_p8 }
  0x51   :  { %p3980_p11 = pnand %p3979_p10, %p3973_p7 }
  0x53   :  { %3983 = shalt.err (!%p3980_p11)
}
  0x54   :  { %s4023_s2 = smov 64   ;;  %s4024_s13 = smov 4  }
  0x55   :  { %74 = dma.hbm_to_vmem [thread:$0]  %s4238_s5, 4096, %s69_s10, [#allocation9], %s4023_s2, %s4023_s2, %s4024_s13  }
  0x56   :  { %4006 = dma.done.wait [#allocation3], 64  }
  0x57   :  { %4007 = vsyncadd [#allocation3], 4294967232 }
  0x58   :  { %4008 = dma.done.wait [#allocation6], 8320  }
  0x59   :  { %4009 = vsyncadd [#allocation6], 4294958976 }
  0x5a   :  { %4010 = dma.done.wait [#allocation9], 36864  }
  0x5b   :  { %4011 = vsyncadd [#allocation9], 4294930432  ;;  %v4025_v0 = vmov 0   ;;  %v96_v1 = vld [vmem:[#allocation5] sm:$0xff]  ;;  %v97_v14 = vld [vmem:[#allocation5 + $0x8] sm:$0xff] }
  0x5c   :  { %589 = vmatprep.mubr.bf16.mxu0 %v4025_v0  ;;  %630 = vmatprep.mubr.bf16.mxu1 %v4025_v0  ;;  %v100_v2 = vld [vmem:[#allocation5 + $0x20] sm:$0xff]  ;;  %v101_v15 = vld [vmem:[#allocation5 + $0x28] sm:$0xff]  ;;  %v98_v58 = vld [vmem:[#allocation5 + $0x10] sm:$0xff] }
  0x5d   :  { %v104_v3 = vld [vmem:[#allocation5 + $0x40] sm:$0xff]  ;;  %v3020_v4 = vcombine.high %v96_v1, %v100_v2  ;;  %v3019_v5 = vcombine.low %v96_v1, %v100_v2  ;;  %v105_v16 = vld [vmem:[#allocation5 + $0x48] sm:$0xff]  ;;  %v3022_v18 = vcombine.high %v97_v14, %v101_v15  ;;  %v3021_v19 = vcombine.low %v97_v14, %v101_v15  ;;  %v102_v59 = vld [vmem:[#allocation5 + $0x30] sm:$0xff] }
  0x5e   :  { %v108_v6 = vld [vmem:[#allocation5 + $0x60] sm:$0xff]  ;;  %v109_v17 = vld [vmem:[#allocation5 + $0x68] sm:$0xff]  ;;  %v3024_v1 = vcombine.high %v98_v58, %v102_v59  ;;  %v4134_v2 = vld [vmem:[#allocation2] sm:$0xf] }
  0x5f   :  { %v3028_v7 = vcombine.high %v104_v3, %v108_v6  ;;  %v112_v8 = vld [vmem:[#allocation5 + $0x80] sm:$0xff]  ;;  %557 = vmatprep.subr.bf16.mxu0 %v3020_v4  ;;  %v3027_v10 = vcombine.low %v104_v3, %v108_v6  ;;  %v3030_v20 = vcombine.high %v105_v16, %v109_v17  ;;  %v113_v22 = vld [vmem:[#allocation5 + $0x88] sm:$0xff]  ;;  %598 = vmatprep.subr.bf16.mxu1 %v3022_v18  ;;  %v106_v4 = vld [vmem:[#allocation5 + $0x50] sm:$0xff] }
  0x60   :  { %v116_v9 = vld [vmem:[#allocation5 + $0xa0] sm:$0xff]  ;;  %558 = vmatpush1.bf16.msra.mxu0 %v3019_v5  ;;  %v117_v23 = vld [vmem:[#allocation5 + $0xa8] sm:$0xff]  ;;  %599 = vmatpush1.bf16.msra.mxu1 %v3021_v19  ;;  %v3029_v27 = vcombine.low %v105_v16, %v109_v17  ;;  %v110_v5 = vld [vmem:[#allocation5 + $0x70] sm:$0xff] }
  0x61   :  { %559 = vmatprep.subr.bf16.mxu0 %v3028_v7  ;;  %v3036_v11 = vcombine.high %v112_v8, %v116_v9  ;;  %v120_v12 = vld [vmem:[#allocation5 + $0xc0] sm:$0xff]  ;;  %v3035_v21 = vcombine.low %v112_v8, %v116_v9  ;;  %600 = vmatprep.subr.bf16.mxu1 %v3030_v20  ;;  %v3038_v28 = vcombine.high %v113_v22, %v117_v23  ;;  %v121_v30 = vld [vmem:[#allocation5 + $0xc8] sm:$0xff]  ;;  %v99_v7 = vld [vmem:[#allocation5 + $0x18] sm:$0xff] }
  0x62   :  { %v124_v13 = vld [vmem:[#allocation5 + $0xe0] sm:$0xff]  ;;  %v125_v31 = vld [vmem:[#allocation5 + $0xe8] sm:$0xff]  ;;  %v3037_v35 = vcombine.low %v113_v22, %v117_v23  ;;  %v3023_v8 = vcombine.low %v98_v58, %v102_v59  ;;  %v103_v9 = vld [vmem:[#allocation5 + $0x38] sm:$0xff]  ;;  %v3031_v16 = vcombine.low %v106_v4, %v110_v5 }
  0x63   :  { %v3044_v24 = vcombine.high %v120_v12, %v124_v13  ;;  %v128_v25 = vld [vmem:[#allocation5 + $0x100] sm:$0xff]  ;;  %v3043_v29 = vcombine.low %v120_v12, %v124_v13  ;;  %v3046_v36 = vcombine.high %v121_v30, %v125_v31  ;;  %v129_v38 = vld [vmem:[#allocation5 + $0x108] sm:$0xff]  ;;  %v3045_v43 = vcombine.low %v121_v30, %v125_v31  ;;  %v114_v12 = vld [vmem:[#allocation5 + $0x90] sm:$0xff] }
  0x64   :  { %560 = vmatpush1.bf16.msra.mxu0 %v3027_v10  ;;  %v132_v26 = vld [vmem:[#allocation5 + $0x120] sm:$0xff]  ;;  %601 = vmatpush1.bf16.msra.mxu1 %v3029_v27  ;;  %v133_v39 = vld [vmem:[#allocation5 + $0x128] sm:$0xff]  ;;  %v3032_v10 = vcombine.high %v106_v4, %v110_v5  ;;  %v118_v13 = vld [vmem:[#allocation5 + $0xb0] sm:$0xff]  ;;  %v3026_v14 = vcombine.high %v99_v7, %v103_v9 }
  0x65   :  { %561 = vmatprep.subr.bf16.mxu0 %v3036_v11  ;;  %v3052_v32 = vcombine.high %v128_v25, %v132_v26  ;;  %v136_v33 = vld [vmem:[#allocation5 + $0x140] sm:$0xff]  ;;  %602 = vmatprep.subr.bf16.mxu1 %v3038_v28  ;;  %v3051_v37 = vcombine.low %v128_v25, %v132_v26  ;;  %v3054_v44 = vcombine.high %v129_v38, %v133_v39  ;;  %v137_v46 = vld [vmem:[#allocation5 + $0x148] sm:$0xff]  ;;  %v107_v15 = vld [vmem:[#allocation5 + $0x58] sm:$0xff] }
  0x66   :  { %v140_v34 = vld [vmem:[#allocation5 + $0x160] sm:$0xff]  ;;  %v141_v47 = vld [vmem:[#allocation5 + $0x168] sm:$0xff]  ;;  %v3053_v51 = vcombine.low %v129_v38, %v133_v39  ;;  %v111_v17 = vld [vmem:[#allocation5 + $0x78] sm:$0xff]  ;;  %v3040_v18 = vcombine.high %v114_v12, %v118_v13 }
  0x67   :  { %v3060_v40 = vcombine.high %v136_v33, %v140_v34  ;;  %v144_v41 = vld [vmem:[#allocation5 + $0x180] sm:$0xff]  ;;  %v3059_v45 = vcombine.low %v136_v33, %v140_v34  ;;  %v3062_v52 = vcombine.high %v137_v46, %v141_v47  ;;  %v145_v53 = vld [vmem:[#allocation5 + $0x188] sm:$0xff]  ;;  %v3061_v57 = vcombine.low %v137_v46, %v141_v47  ;;  %v122_v19 = vld [vmem:[#allocation5 + $0xd0] sm:$0xff] }
  0x68   :  { %562 = vmatpush1.bf16.msra.mxu0 %v3035_v21  ;;  %v148_v42 = vld [vmem:[#allocation5 + $0x1a0] sm:$0xff]  ;;  %603 = vmatpush1.bf16.msra.mxu1 %v3037_v35  ;;  %v149_v55 = vld [vmem:[#allocation5 + $0x1a8] sm:$0xff]  ;;  %v126_v20 = vld [vmem:[#allocation5 + $0xf0] sm:$0xff]  ;;  %v3025_v21 = vcombine.low %v99_v7, %v103_v9  ;;  %v3034_v22 = vcombine.high %v107_v15, %v111_v17 }
  0x69   :  { %563 = vmatprep.subr.bf16.mxu0 %v3044_v24  ;;  %604 = vmatprep.subr.bf16.mxu1 %v3046_v36  ;;  %v3068_v48 = vcombine.high %v144_v41, %v148_v42  ;;  %v152_v49 = vld [vmem:[#allocation5 + $0x1c0] sm:$0xff]  ;;  %v3067_v54 = vcombine.low %v144_v41, %v148_v42  ;;  %v3070_v60 = vcombine.high %v145_v53, %v149_v55  ;;  %v153_v61 = vld [vmem:[#allocation5 + $0x1c8] sm:$0xff]  ;;  %v115_v23 = vld [vmem:[#allocation5 + $0x98] sm:$0xff] }
  0x6a   :  { %v156_v50 = vld [vmem:[#allocation5 + $0x1e0] sm:$0xff]  ;;  %v157_v63 = vld [vmem:[#allocation5 + $0x1e8] sm:$0xff]  ;;  %v3069_v3 = vcombine.low %v145_v53, %v149_v55  ;;  %v3039_v24 = vcombine.low %v114_v12, %v118_v13  ;;  %v119_v25 = vld [vmem:[#allocation5 + $0xb8] sm:$0xff]  ;;  %v3048_v26 = vcombine.high %v122_v19, %v126_v20 }
  0x6b   :  { %v3076_v56 = vcombine.high %v152_v49, %v156_v50  ;;  %v3075_v62 = vcombine.low %v152_v49, %v156_v50  ;;  %v3078_v6 = vcombine.high %v153_v61, %v157_v63  ;;  %v3077_v11 = vcombine.low %v153_v61, %v157_v63  ;;  %v130_v27 = vld [vmem:[#allocation5 + $0x110] sm:$0xff]  ;;  %v123_v31 = vld [vmem:[#allocation5 + $0xd8] sm:$0xff] }
  0x6c   :  { %564 = vmatpush1.bf16.msra.mxu0 %v3043_v29  ;;  %605 = vmatpush1.bf16.msra.mxu1 %v3045_v43  ;;  %v134_v28 = vld [vmem:[#allocation5 + $0x130] sm:$0xff]  ;;  %v3033_v29 = vcombine.low %v107_v15, %v111_v17  ;;  %v3042_v30 = vcombine.high %v115_v23, %v119_v25  ;;  %v127_v33 = vld [vmem:[#allocation5 + $0xf8] sm:$0xff] }
  0x6d   :  { %565 = vmatprep.subr.bf16.mxu0 %v3052_v32  ;;  %606 = vmatprep.subr.bf16.mxu1 %v3054_v44  ;;  %v3047_v32 = vcombine.low %v122_v19, %v126_v20  ;;  %v3056_v34 = vcombine.high %v130_v27, %v134_v28  ;;  %v138_v35 = vld [vmem:[#allocation5 + $0x150] sm:$0xff]  ;;  %v3050_v38 = vcombine.high %v123_v31, %v127_v33  ;;  %v131_v39 = vld [vmem:[#allocation5 + $0x118] sm:$0xff] }
  0x6e   :  { %v142_v36 = vld [vmem:[#allocation5 + $0x170] sm:$0xff]  ;;  %v135_v41 = vld [vmem:[#allocation5 + $0x138] sm:$0xff]  ;;  %v3049_v44 = vcombine.low %v123_v31, %v127_v33 }
  0x6f   :  { %v146_v42 = vld [vmem:[#allocation5 + $0x190] sm:$0xff]  ;;  %v139_v46 = vld [vmem:[#allocation5 + $0x158] sm:$0xff]  ;;  %v3063_v47 = vcombine.low %v138_v35, %v142_v36 }
  0x70   :  { %566 = vmatpush1.bf16.msra.mxu0 %v3051_v37  ;;  %607 = vmatpush1.bf16.msra.mxu1 %v3053_v51  ;;  %v3041_v37 = vcombine.low %v115_v23, %v119_v25  ;;  %v150_v43 = vld [vmem:[#allocation5 + $0x1b0] sm:$0xff]  ;;  %v155_v59 = vld [vmem:[#allocation5 + $0x1d8] sm:$0xff] }
  0x71   :  { %567 = vmatprep.subr.bf16.mxu0 %v3060_v40  ;;  %608 = vmatprep.subr.bf16.mxu1 %v3062_v52  ;;  %v3055_v40 = vcombine.low %v130_v27, %v134_v28  ;;  %v3072_v49 = vcombine.high %v146_v42, %v150_v43  ;;  %v154_v50 = vld [vmem:[#allocation5 + $0x1d0] sm:$0xff]  ;;  %v3057_v52 = vcombine.low %v131_v39, %v135_v41  ;;  %v3466_v5 = vld [vmem:[#allocation8 + $0x24] ss:$16 sps:$4 sm:$0xff]   ;;  %v3470_v12 = vld [vmem:[#allocation8 + $0x40] ss:$16 sps:$4 sm:$0xff]  }
  0x72   :  { %v158_v51 = vld [vmem:[#allocation5 + $0x1f0] sm:$0xff]  ;;  %v3071_v55 = vcombine.low %v146_v42, %v150_v43  ;;  %v3472_v9 = vld [vmem:[#allocation8 + $0x44] ss:$16 sps:$4 sm:$0xff]   ;;  %v3482_v20 = vld [vmem:[#allocation8 + $0x80] ss:$16 sps:$4 sm:$0xff]  }
  0x73   :  { %v3079_v63 = vcombine.low %v154_v50, %v158_v51  ;;  %v3478_v13 = vld [vmem:[#allocation8 + $0x64] ss:$16 sps:$4 sm:$0xff]   ;;  %v3475_v15 = vld [vmem:[#allocation8 + $0x4c] ss:$16 sps:$4 sm:$0xff]   ;;  %v3485_v25 = vld [vmem:[#allocation8 + $0x88] ss:$16 sps:$4 sm:$0xff]  }
  0x74   :  { %568 = vmatpush1.bf16.msra.mxu0 %v3059_v45  ;;  %609 = vmatpush1.bf16.msra.mxu1 %v3061_v57  ;;  %v3058_v45 = vcombine.high %v131_v39, %v135_v41  ;;  %v3080_v57 = vcombine.high %v154_v50, %v158_v51  ;;  %v3484_v17 = vld [vmem:[#allocation8 + $0x84] ss:$16 sps:$4 sm:$0xff]   ;;  %v3481_v19 = vld [vmem:[#allocation8 + $0x6c] ss:$16 sps:$4 sm:$0xff]   ;;  %v3494_v27 = vld [vmem:[#allocation8 + $0xc0] ss:$16 sps:$4 sm:$0xff]  }
  0x75   :  { %569 = vmatprep.subr.bf16.mxu0 %v3068_v48  ;;  %610 = vmatprep.subr.bf16.mxu1 %v3070_v60  ;;  %v143_v48 = vld [vmem:[#allocation5 + $0x178] sm:$0xff]  ;;  %v3487_v23 = vld [vmem:[#allocation8 + $0x8c] ss:$16 sps:$4 sm:$0xff]   ;;  %v3497_v33 = vld [vmem:[#allocation8 + $0xc8] ss:$16 sps:$4 sm:$0xff]  }
  0x76   :  { %v3066_v53 = vcombine.high %v139_v46, %v143_v48  ;;  %v3065_v58 = vcombine.low %v139_v46, %v143_v48  ;;  %v159_v60 = vld [vmem:[#allocation5 + $0x1f8] sm:$0xff]  ;;  %v3509_v41 = vld [vmem:[#allocation8 + $0x108] ss:$16 sps:$4 sm:$0xff]  }
  0x77   :  { %v3082_v4 = vcombine.high %v155_v59, %v159_v60  ;;  %v3081_v7 = vcombine.low %v155_v59, %v159_v60  ;;  %v3502_v28 = vld [vmem:[#allocation8 + $0xe4] ss:$16 sps:$4 sm:$0xff]   ;;  %v3500_v31 = vld [vmem:[#allocation8 + $0xe0] ss:$16 sps:$4 sm:$0xff]   ;;  %v3521_v48 = vld [vmem:[#allocation8 + $0x148] ss:$16 sps:$4 sm:$0xff]  }
  0x78   :  { %570 = vmatpush1.bf16.msra.mxu0 %v3067_v54  ;;  %611 = vmatpush1.bf16.msra.mxu1 %v3069_v3  ;;  %v147_v54 = vld [vmem:[#allocation5 + $0x198] sm:$0xff]  ;;  %v3547_v60 = vld [vmem:[#allocation8 + $0x1cc] ss:$16 sps:$4 sm:$0xff]  }
  0x79   :  { %571 = vmatprep.subr.bf16.mxu0 %v3076_v56  ;;  %612 = vmatprep.subr.bf16.mxu1 %v3078_v6  ;;  %v151_v56 = vld [vmem:[#allocation5 + $0x1b8] sm:$0xff]  ;;  %v3463_v6 = vld [vmem:[#allocation8 + $0xc] ss:$16 sps:$4 sm:$0xff]  }
  0x7a   :  { %v3074_v61 = vcombine.high %v147_v54, %v151_v56  ;;  %v3458_v3 = vld [vmem:[#allocation8] ss:$16 sps:$4 sm:$0xff]   ;;  %v3526_v43 = vld [vmem:[#allocation8 + $0x164] ss:$16 sps:$4 sm:$0xff]  }
  0x7b   :  { %v3512_v39 = vld [vmem:[#allocation8 + $0x120] ss:$16 sps:$4 sm:$0xff]   ;;  %v3538_v51 = vld [vmem:[#allocation8 + $0x1a4] ss:$16 sps:$4 sm:$0xff]  }
  0x7c   :  { %572 = vmatpush1.bf16.msra.mxu0 %v3075_v62  ;;  %613 = vmatpush1.bf16.msra.mxu1 %v3077_v11  ;;  %v3460_v62 = vld [vmem:[#allocation8 + $0x4] ss:$16 sps:$4 sm:$0xff]   ;;  %v3469_v11 = vld [vmem:[#allocation8 + $0x2c] ss:$16 sps:$4 sm:$0xff]   ;;  %v3518_v42 = vld [vmem:[#allocation8 + $0x140] ss:$16 sps:$4 sm:$0xff]  }
  0x7d   :  { %639 = vmatprep.subr.bf16.mxu0 %v3024_v1  ;;  %680 = vmatprep.subr.bf16.mxu1 %v3026_v14  ;;  %v3073_v1 = vcombine.low %v147_v54, %v151_v56  ;;  %v3467_v14 = vld [vmem:[#allocation8 + $0x28] ss:$16 sps:$4 sm:$0xff]   ;;  %v3524_v46 = vld [vmem:[#allocation8 + $0x160] ss:$16 sps:$4 sm:$0xff]   ;;  %v3541_v56 = vld [vmem:[#allocation8 + $0x1ac] ss:$16 sps:$4 sm:$0xff]  }
  0x7e   :  { %v3530_v50 = vld [vmem:[#allocation8 + $0x180] ss:$16 sps:$4 sm:$0xff]   ;;  %v3533_v54 = vld [vmem:[#allocation8 + $0x188] ss:$16 sps:$4 sm:$0xff]  }
  0x7f   :  { %590 = vmatmul.mubr.bf16.vlgmr.msra.gmra.mrb[0].mxu0 %v4134_v2  ;;  %631 = vmatmul.mubr.bf16.vlgmr.msra.gmra.mrb[0].mxu1 %v4134_v2  ;;  %v3542_v59 = vld [vmem:[#allocation8 + $0x1c0] ss:$16 sps:$4 sm:$0xff]  }
  0x80   :  { %640 = vmatpush1.bf16.msra.mxu0 %v3023_v8  ;;  %671 = vmatprep.mubr.bf16.mxu0 %v4025_v0  ;;  %v3464_v8 = vld [vmem:[#allocation8 + $0x20] ss:$16 sps:$4 sm:$0xff]  }
  0x81   :  { %641 = vmatprep.subr.bf16.mxu0 %v3032_v10  ;;  %681 = vmatpush1.bf16.msra.mxu1 %v3025_v21  ;;  %v3461_v10 = vld [vmem:[#allocation8 + $0x8] ss:$16 sps:$4 sm:$0xff]   ;;  %v3490_v21 = vld [vmem:[#allocation8 + $0xa4] ss:$16 sps:$4 sm:$0xff]  }
  0x82   :  { %712 = vmatprep.mubr.bf16.mxu1 %v4025_v0  ;;  %682 = vmatprep.subr.bf16.mxu1 %v3034_v22  ;;  %v3064_v0 = vcombine.high %v138_v35, %v142_v36  ;;  %v3479_v22 = vld [vmem:[#allocation8 + $0x68] ss:$16 sps:$4 sm:$0xff]   ;;  %v3506_v35 = vld [vmem:[#allocation8 + $0x100] ss:$16 sps:$4 sm:$0xff]   ;;  %v3514_v36 = vld [vmem:[#allocation8 + $0x124] ss:$16 sps:$4 sm:$0xff]  }
  0x84   :  { %642 = vmatpush1.bf16.msra.mxu0 %v3031_v16  ;;  %v3476_v16 = vld [vmem:[#allocation8 + $0x60] ss:$16 sps:$4 sm:$0xff]  }
  0x85   :  { %643 = vmatprep.subr.bf16.mxu0 %v3040_v18  ;;  %683 = vmatpush1.bf16.msra.mxu1 %v3033_v29  ;;  %v3473_v18 = vld [vmem:[#allocation8 + $0x48] ss:$16 sps:$4 sm:$0xff]  }
  0x86   :  { %684 = vmatprep.subr.bf16.mxu1 %v3042_v30  ;;  %v3491_v29 = vld [vmem:[#allocation8 + $0xa8] ss:$16 sps:$4 sm:$0xff]   ;;  %v3499_v30 = vld [vmem:[#allocation8 + $0xcc] ss:$16 sps:$4 sm:$0xff]  }
  0x88   :  { %644 = vmatpush1.bf16.msra.mxu0 %v3039_v24  ;;  %v3496_v24 = vld [vmem:[#allocation8 + $0xc4] ss:$16 sps:$4 sm:$0xff]  }
  0x89   :  { %645 = vmatprep.subr.bf16.mxu0 %v3048_v26  ;;  %685 = vmatpush1.bf16.msra.mxu1 %v3041_v37  ;;  %v3493_v26 = vld [vmem:[#allocation8 + $0xac] ss:$16 sps:$4 sm:$0xff]   ;;  %v3503_v37 = vld [vmem:[#allocation8 + $0xe8] ss:$16 sps:$4 sm:$0xff]  }
  0x8a   :  { %686 = vmatprep.subr.bf16.mxu1 %v3050_v38  ;;  %v3511_v38 = vld [vmem:[#allocation8 + $0x10c] ss:$16 sps:$4 sm:$0xff]  }
  0x8c   :  { %646 = vmatpush1.bf16.msra.mxu0 %v3047_v32  ;;  %v3508_v32 = vld [vmem:[#allocation8 + $0x104] ss:$16 sps:$4 sm:$0xff]  }
  0x8d   :  { %647 = vmatprep.subr.bf16.mxu0 %v3056_v34  ;;  %687 = vmatpush1.bf16.msra.mxu1 %v3049_v44  ;;  %v3505_v34 = vld [vmem:[#allocation8 + $0xec] ss:$16 sps:$4 sm:$0xff]   ;;  %v3515_v44 = vld [vmem:[#allocation8 + $0x128] ss:$16 sps:$4 sm:$0xff]  }
  0x8e   :  { %688 = vmatprep.subr.bf16.mxu1 %v3058_v45  ;;  %v3523_v45 = vld [vmem:[#allocation8 + $0x14c] ss:$16 sps:$4 sm:$0xff]  }
  0x90   :  { %648 = vmatpush1.bf16.msra.mxu0 %v3055_v40  ;;  %v3520_v40 = vld [vmem:[#allocation8 + $0x144] ss:$16 sps:$4 sm:$0xff]  }
  0x91   :  { %649 = vmatprep.subr.bf16.mxu0 %v3064_v0  ;;  %689 = vmatpush1.bf16.msra.mxu1 %v3057_v52  ;;  %v3517_v0 = vld [vmem:[#allocation8 + $0x12c] ss:$16 sps:$4 sm:$0xff]   ;;  %v3527_v52 = vld [vmem:[#allocation8 + $0x168] ss:$16 sps:$4 sm:$0xff]  }
  0x92   :  { %690 = vmatprep.subr.bf16.mxu1 %v3066_v53  ;;  %v3535_v53 = vld [vmem:[#allocation8 + $0x18c] ss:$16 sps:$4 sm:$0xff]  }
  0x94   :  { %650 = vmatpush1.bf16.msra.mxu0 %v3063_v47  ;;  %v3532_v47 = vld [vmem:[#allocation8 + $0x184] ss:$16 sps:$4 sm:$0xff]  }
  0x95   :  { %651 = vmatprep.subr.bf16.mxu0 %v3072_v49  ;;  %691 = vmatpush1.bf16.msra.mxu1 %v3065_v58  ;;  %v3529_v49 = vld [vmem:[#allocation8 + $0x16c] ss:$16 sps:$4 sm:$0xff]   ;;  %v3539_v58 = vld [vmem:[#allocation8 + $0x1a8] ss:$16 sps:$4 sm:$0xff]  }
  0x96   :  { %692 = vmatprep.subr.bf16.mxu1 %v3074_v61  ;;  %v3550_v61 = vld [vmem:[#allocation8 + $0x1e4] ss:$16 sps:$4 sm:$0xff]  }
  0x98   :  { %652 = vmatpush1.bf16.msra.mxu0 %v3071_v55  ;;  %v3536_v55 = vld [vmem:[#allocation8 + $0x1a0] ss:$16 sps:$4 sm:$0xff]  }
  0x99   :  { %653 = vmatprep.subr.bf16.mxu0 %v3080_v57  ;;  %693 = vmatpush1.bf16.msra.mxu1 %v3073_v1  ;;  %v3544_v57 = vld [vmem:[#allocation8 + $0x1c4] ss:$16 sps:$4 sm:$0xff]   ;;  %v3553_v1 = vld [vmem:[#allocation8 + $0x1ec] ss:$16 sps:$4 sm:$0xff]  }
  0x9a   :  { %694 = vmatprep.subr.bf16.mxu1 %v3082_v4  ;;  %v3551_v4 = vld [vmem:[#allocation8 + $0x1e8] ss:$16 sps:$4 sm:$0xff]  }
  0x9c   :  { %654 = vmatpush1.bf16.msra.mxu0 %v3079_v63  ;;  %v3548_v63 = vld [vmem:[#allocation8 + $0x1e0] ss:$16 sps:$4 sm:$0xff]  }
  0x9d   :  { %2312 = vmatprep.subr.bf16.mxu0 %v3460_v62  ;;  %695 = vmatpush1.bf16.msra.mxu1 %v3081_v7  ;;  %v3545_v62 = vld [vmem:[#allocation8 + $0x1c8] ss:$16 sps:$4 sm:$0xff]  }
  0x9e   :  { %2476 = vmatprep.subr.bf16.mxu1 %v3463_v6  ;;  %v165_v6 = vlaneseq }
  0x9f   :  { %672 = vmatmul.mubr.bf16.vlgmr.msra.gmra.mrb[4].mxu0 %v4134_v2 }
  0xa0   :  { %2313 = vmatpush1.bf16.msra.mxu0 %v3458_v3  ;;  %713 = vmatmul.mubr.bf16.vlgmr.msra.gmra.mrb[4].mxu1 %v4134_v2  ;;  %v3488_v2 = vld [vmem:[#allocation8 + $0xa0] ss:$16 sps:$4 sm:$0xff]   ;;  %v3556_v3 = vld [vmem:[#allocation8 + $0x204] ss:$16 sps:$4 sm:$0xff]   ;;  %v4142_v7 = vshrl.u32 %v165_v6, 7 }
  0xa1   :  { %2314 = vmatprep.subr.bf16.mxu0 %v3466_v5  ;;  %2477 = vmatpush1.bf16.msra.mxu1 %v3461_v10  ;;  %v3559_v5 = vld [vmem:[#allocation8 + $0x20c] ss:$16 sps:$4 sm:$0xff]   ;;  %v3596_v6 = vld [vmem:[#allocation8 + $0x2e0] ss:$16 sps:$4 sm:$0xff]  }
  0xa2   :  { %2478 = vmatprep.subr.bf16.mxu1 %v3469_v11  ;;  %v4150_v10 = vsub.s32 0, %v4142_v7  ;;  %v4153_v11 = vsub.s32 2, %v4142_v7 }
  0xa4   :  { %2315 = vmatpush1.bf16.msra.mxu0 %v3464_v8  ;;  %v4144_v8 = vld [vmem:[#allocation7] sm:$0xff] }
  0xa5   :  { %2316 = vmatprep.subr.bf16.mxu0 %v3472_v9  ;;  %2479 = vmatpush1.bf16.msra.mxu1 %v3467_v14  ;;  %v4147_v9 = vunpack.c.l.bf16 %v4144_v8  ;;  %v4160_v14 = vsub.s32 6, %v4142_v7 }
  0xa6   :  { %2480 = vmatprep.subr.bf16.mxu1 %v3475_v15 }
  0xa8   :  { %2317 = vmatpush1.bf16.msra.mxu0 %v3470_v12  ;;  %v168_v12 = vrot.slane %v4147_v9, %v4150_v10 }
  0xa9   :  { %2318 = vmatprep.subr.bf16.mxu0 %v3478_v13  ;;  %2481 = vmatpush1.bf16.msra.mxu1 %v3473_v18  ;;  %v172_v13 = vrot.slane %v4147_v9, %v4153_v11  ;;  %v180_v18 = vrot.slane %v4147_v9, %v4160_v14 }
  0xaa   :  { %2482 = vmatprep.subr.bf16.mxu1 %v3481_v19  ;;  %v208_v15 = vrot.slane %v168_v12, %v4150_v10  ;;  %v3604_v12 = vld [vmem:[#allocation8 + $0x304] ss:$16 sps:$4 sm:$0xff]  }
  0xac   :  { %2319 = vmatpush1.bf16.msra.mxu0 %v3476_v16  ;;  %v212_v16 = vrot.slane %v172_v13, %v4150_v10  ;;  %v3607_v13 = vld [vmem:[#allocation8 + $0x30c] ss:$16 sps:$4 sm:$0xff]  }
  0xad   :  { %2320 = vmatprep.subr.bf16.mxu0 %v3484_v17  ;;  %2483 = vmatpush1.bf16.msra.mxu1 %v3479_v22 }
  0xae   :  { %2484 = vmatprep.subr.bf16.mxu1 %v3487_v23 }
  0xb0   :  { %2321 = vmatpush1.bf16.msra.mxu0 %v3482_v20 }
  0xb1   :  { %2322 = vmatprep.subr.bf16.mxu0 %v3490_v21  ;;  %2485 = vmatpush1.bf16.msra.mxu1 %v3485_v25  ;;  %v220_v25 = vrot.slane %v180_v18, %v4150_v10  ;;  %v3602_v18 = vld [vmem:[#allocation8 + $0x300] ss:$16 sps:$4 sm:$0xff]  }
  0xb2   :  { %2486 = vmatprep.subr.bf16.mxu1 %v3493_v26 }
  0xb4   :  { %2323 = vmatpush1.bf16.msra.mxu0 %v3488_v2 }
  0xb5   :  { %2324 = vmatprep.subr.bf16.mxu0 %v3496_v24  ;;  %2487 = vmatpush1.bf16.msra.mxu1 %v3491_v29 }
  0xb6   :  { %2488 = vmatprep.subr.bf16.mxu1 %v3499_v30 }
  0xb8   :  { %2325 = vmatpush1.bf16.msra.mxu0 %v3494_v27  ;;  %v3554_v27 = vld [vmem:[#allocation8 + $0x200] ss:$16 sps:$4 sm:$0xff]  }
  0xb9   :  { %2326 = vmatprep.subr.bf16.mxu0 %v3502_v28  ;;  %2489 = vmatpush1.bf16.msra.mxu1 %v3497_v33  ;;  %v3557_v28 = vld [vmem:[#allocation8 + $0x208] ss:$16 sps:$4 sm:$0xff]  }
  0xba   :  { %2490 = vmatprep.subr.bf16.mxu1 %v3505_v34 }
  0xbc   :  { %2327 = vmatpush1.bf16.msra.mxu0 %v3500_v31  ;;  %v3562_v31 = vld [vmem:[#allocation8 + $0x224] ss:$16 sps:$4 sm:$0xff]  }
  0xbd   :  { %2328 = vmatprep.subr.bf16.mxu0 %v3508_v32  ;;  %2491 = vmatpush1.bf16.msra.mxu1 %v3503_v37  ;;  %v3565_v32 = vld [vmem:[#allocation8 + $0x22c] ss:$16 sps:$4 sm:$0xff]   ;;  %v3560_v37 = vld [vmem:[#allocation8 + $0x220] ss:$16 sps:$4 sm:$0xff]  }
  0xbe   :  { %2492 = vmatprep.subr.bf16.mxu1 %v3511_v38  ;;  %v3563_v38 = vld [vmem:[#allocation8 + $0x228] ss:$16 sps:$4 sm:$0xff]  }
  0xc0   :  { %2329 = vmatpush1.bf16.msra.mxu0 %v3506_v35 }
  0xc1   :  { %2330 = vmatprep.subr.bf16.mxu0 %v3514_v36  ;;  %2493 = vmatpush1.bf16.msra.mxu1 %v3509_v41  ;;  %v3571_v41 = vld [vmem:[#allocation8 + $0x24c] ss:$16 sps:$4 sm:$0xff]  }
  0xc2   :  { %2494 = vmatprep.subr.bf16.mxu1 %v3517_v0 }
  0xc4   :  { %2331 = vmatpush1.bf16.msra.mxu0 %v3512_v39 }
  0xc5   :  { %2332 = vmatprep.subr.bf16.mxu0 %v3520_v40  ;;  %2495 = vmatpush1.bf16.msra.mxu1 %v3515_v44  ;;  %v3568_v40 = vld [vmem:[#allocation8 + $0x244] ss:$16 sps:$4 sm:$0xff]  }
  0xc6   :  { %2496 = vmatprep.subr.bf16.mxu1 %v3523_v45  ;;  %v3574_v44 = vld [vmem:[#allocation8 + $0x264] ss:$16 sps:$4 sm:$0xff]   ;;  %v3577_v45 = vld [vmem:[#allocation8 + $0x26c] ss:$16 sps:$4 sm:$0xff]  }
  0xc8   :  { %2333 = vmatpush1.bf16.msra.mxu0 %v3518_v42  ;;  %v3566_v42 = vld [vmem:[#allocation8 + $0x240] ss:$16 sps:$4 sm:$0xff]  }
  0xc9   :  { %2334 = vmatprep.subr.bf16.mxu0 %v3526_v43  ;;  %2497 = vmatpush1.bf16.msra.mxu1 %v3521_v48  ;;  %v3569_v43 = vld [vmem:[#allocation8 + $0x248] ss:$16 sps:$4 sm:$0xff]   ;;  %v3580_v48 = vld [vmem:[#allocation8 + $0x284] ss:$16 sps:$4 sm:$0xff]  }
  0xca   :  { %2498 = vmatprep.subr.bf16.mxu1 %v3529_v49  ;;  %v3583_v49 = vld [vmem:[#allocation8 + $0x28c] ss:$16 sps:$4 sm:$0xff]  }
  0xcc   :  { %2335 = vmatpush1.bf16.msra.mxu0 %v3524_v46  ;;  %v3572_v46 = vld [vmem:[#allocation8 + $0x260] ss:$16 sps:$4 sm:$0xff]  }
  0xcd   :  { %2336 = vmatprep.subr.bf16.mxu0 %v3532_v47  ;;  %2499 = vmatpush1.bf16.msra.mxu1 %v3527_v52  ;;  %v3575_v47 = vld [vmem:[#allocation8 + $0x268] ss:$16 sps:$4 sm:$0xff]   ;;  %v3586_v52 = vld [vmem:[#allocation8 + $0x2a4] ss:$16 sps:$4 sm:$0xff]  }
  0xce   :  { %2500 = vmatprep.subr.bf16.mxu1 %v3535_v53  ;;  %v3589_v53 = vld [vmem:[#allocation8 + $0x2ac] ss:$16 sps:$4 sm:$0xff]  }
  0xd0   :  { %2337 = vmatpush1.bf16.msra.mxu0 %v3530_v50  ;;  %v3578_v50 = vld [vmem:[#allocation8 + $0x280] ss:$16 sps:$4 sm:$0xff]  }
  0xd1   :  { %2338 = vmatprep.subr.bf16.mxu0 %v3538_v51  ;;  %2501 = vmatpush1.bf16.msra.mxu1 %v3533_v54  ;;  %v3581_v51 = vld [vmem:[#allocation8 + $0x288] ss:$16 sps:$4 sm:$0xff]   ;;  %v3584_v54 = vld [vmem:[#allocation8 + $0x2a0] ss:$16 sps:$4 sm:$0xff]  }
  0xd2   :  { %2502 = vmatprep.subr.bf16.mxu1 %v3541_v56  ;;  %v3592_v56 = vld [vmem:[#allocation8 + $0x2c4] ss:$16 sps:$4 sm:$0xff]  }
  0xd4   :  { %2339 = vmatpush1.bf16.msra.mxu0 %v3536_v55  ;;  %v3587_v55 = vld [vmem:[#allocation8 + $0x2a8] ss:$16 sps:$4 sm:$0xff]  }
  0xd5   :  { %2340 = vmatprep.subr.bf16.mxu0 %v3544_v57  ;;  %2503 = vmatpush1.bf16.msra.mxu1 %v3539_v58  ;;  %v3595_v57 = vld [vmem:[#allocation8 + $0x2cc] ss:$16 sps:$4 sm:$0xff]   ;;  %v4170_v58 = vsub.s32 4, %v4142_v7  ;;  %v3599_v7 = vld [vmem:[#allocation8 + $0x2e8] ss:$16 sps:$4 sm:$0xff]  }
  0xd6   :  { %2504 = vmatprep.subr.bf16.mxu1 %v3547_v60  ;;  %v3590_v60 = vld [vmem:[#allocation8 + $0x2c0] ss:$16 sps:$4 sm:$0xff]  }
  0xd8   :  { %2341 = vmatpush1.bf16.msra.mxu0 %v3542_v59  ;;  %v4173_v59 = vunpack.c.h.bf16 %v4144_v8 }
  0xd9   :  { %2342 = vmatprep.subr.bf16.mxu0 %v3550_v61  ;;  %2505 = vmatpush1.bf16.msra.mxu1 %v3545_v62  ;;  %v3593_v61 = vld [vmem:[#allocation8 + $0x2c8] ss:$16 sps:$4 sm:$0xff]   ;;  %v3598_v62 = vld [vmem:[#allocation8 + $0x2e4] ss:$16 sps:$4 sm:$0xff]  }
  0xda   :  { %2506 = vmatprep.subr.bf16.mxu1 %v3553_v1  ;;  %v192_v1 = vrot.slane %v4173_v59, %v4170_v58 }
  0xdc   :  { %2343 = vmatpush1.bf16.msra.mxu0 %v3548_v63  ;;  %v3601_v63 = vld [vmem:[#allocation8 + $0x2ec] ss:$16 sps:$4 sm:$0xff]  }
  0xdd   :  { %2353 = vmatprep.subr.bf16.mxu0 %v3556_v3  ;;  %2507 = vmatpush1.bf16.msra.mxu1 %v3551_v4  ;;  %v196_v4 = vrot.slane %v4173_v59, %v4160_v14 }
  0xde   :  { %2517 = vmatprep.subr.bf16.mxu1 %v3559_v5 }
 0x152   :  { %v591_v17 = vpop.f32.mrb[0].mxu0  ;;  %v4167_v29 = vpop.f32.mrb[0].mxu1 }
 0x153   :  { %v592_v19 = vadd.f32 %v591_v17, %v208_v15  ;;  %v593_v20 = vpop.f32.mrb[1].mxu0  ;;  %v634_v33 = vpop.f32.mrb[1].mxu1  ;;  %v236_v17 = vrot.slane %v196_v4, %v4150_v10  ;;  %v3653_v4 = vld [vmem:[#allocation8 + $0x408] ss:$16 sps:$4 sm:$0xff]  }
 0x154   :  { %v594_v21 = vadd.f32 %v593_v20, %v212_v16  ;;  %v595_v22 = vpop.f32.mrb[2].mxu0  ;;  %v635_v34 = vadd.f32 %v634_v33, %v220_v25  ;;  %v636_v35 = vpop.f32.mrb[2].mxu1  ;;  %v232_v16 = vrot.slane %v192_v1, %v4150_v10  ;;  %v3617_v33 = vld [vmem:[#allocation8 + $0x348] ss:$16 sps:$4 sm:$0xff]   ;;  %v3650_v1 = vld [vmem:[#allocation8 + $0x400] ss:$16 sps:$4 sm:$0xff]  }
 0x155   :  { %v721_v23 = vmax.f32 %v592_v19, 0.0  ;;  %v596_v2 = vpop.f32.mrb[3].mxu0  ;;  %v637_v36 = vpop.f32.mrb[3].mxu1  ;;  %v3605_v19 = vld [vmem:[#allocation8 + $0x308] ss:$16 sps:$4 sm:$0xff]  }
 0x156   :  { %v722_v24 = vmax.f32 %v594_v21, 0.0  ;;  %v724_v39 = vmax.f32 %v635_v34, 0.0  ;;  %v3610_v21 = vld [vmem:[#allocation8 + $0x324] ss:$16 sps:$4 sm:$0xff]   ;;  %v3613_v22 = vld [vmem:[#allocation8 + $0x32c] ss:$16 sps:$4 sm:$0xff]  }
 0x157   :  { %v729_v30 = vpack.c.bf16 %v721_v23, %v721_v23  ;;  %v3622_v34 = vld [vmem:[#allocation8 + $0x364] ss:$16 sps:$4 sm:$0xff]   ;;  %v3625_v35 = vld [vmem:[#allocation8 + $0x36c] ss:$16 sps:$4 sm:$0xff]   ;;  %v3620_v36 = vld [vmem:[#allocation8 + $0x360] ss:$16 sps:$4 sm:$0xff]  }
 0x158   :  { %v730_v26 = vpack.c.bf16 %v722_v24, %v722_v24  ;;  %v732_v0 = vpack.c.bf16 %v724_v39, %v724_v39  ;;  %v3631_v39 = vld [vmem:[#allocation8 + $0x38c] ss:$16 sps:$4 sm:$0xff]  }
 0x15a   :  { %2344 = vmatprep.mubr.bf16.mxu0 %v730_v26  ;;  %2508 = vmatprep.mubr.bf16.mxu1 %v730_v26 }
 0x15b   :  { %2345 = vmatmul.mubr.bf16.vlgmr.msra.gmra.mrb[8].mxu0 %v729_v30  ;;  %2509 = vmatmul.mubr.bf16.vlgmr.msra.gmra.mrb[8].mxu1 %v729_v30  ;;  %v3616_v30 = vld [vmem:[#allocation8 + $0x344] ss:$16 sps:$4 sm:$0xff]  }
 0x15c   :  { %2354 = vmatpush1.bf16.msra.mxu0 %v3554_v27  ;;  %2518 = vmatpush1.bf16.msra.mxu1 %v3557_v28  ;;  %v3608_v27 = vld [vmem:[#allocation8 + $0x320] ss:$16 sps:$4 sm:$0xff]   ;;  %v3611_v28 = vld [vmem:[#allocation8 + $0x328] ss:$16 sps:$4 sm:$0xff]  }
 0x15d   :  { %2355 = vmatprep.subr.bf16.mxu0 %v3562_v31  ;;  %2519 = vmatprep.subr.bf16.mxu1 %v3565_v32  ;;  %v3619_v31 = vld [vmem:[#allocation8 + $0x34c] ss:$16 sps:$4 sm:$0xff]   ;;  %v3614_v32 = vld [vmem:[#allocation8 + $0x340] ss:$16 sps:$4 sm:$0xff]  }
 0x15e   :  { %2385 = vmatprep.mubr.bf16.mxu0 %v732_v0  ;;  %2549 = vmatprep.mubr.bf16.mxu1 %v732_v0  ;;  %v3629_v0 = vld [vmem:[#allocation8 + $0x388] ss:$16 sps:$4 sm:$0xff]  }
 0x160   :  { %2356 = vmatpush1.bf16.msra.mxu0 %v3560_v37  ;;  %2520 = vmatpush1.bf16.msra.mxu1 %v3563_v38  ;;  %v3623_v37 = vld [vmem:[#allocation8 + $0x368] ss:$16 sps:$4 sm:$0xff]   ;;  %v3628_v38 = vld [vmem:[#allocation8 + $0x384] ss:$16 sps:$4 sm:$0xff]  }
 0x161   :  { %2357 = vmatprep.subr.bf16.mxu0 %v3568_v40  ;;  %2521 = vmatprep.subr.bf16.mxu1 %v3571_v41  ;;  %v176_v40 = vrot.slane %v4147_v9, %v4170_v58  ;;  %v3626_v41 = vld [vmem:[#allocation8 + $0x380] ss:$16 sps:$4 sm:$0xff]   ;;  %v3640_v9 = vld [vmem:[#allocation8 + $0x3c4] ss:$16 sps:$4 sm:$0xff]  }
 0x164   :  { %2358 = vmatpush1.bf16.msra.mxu0 %v3566_v42  ;;  %2522 = vmatpush1.bf16.msra.mxu1 %v3569_v43  ;;  %v3634_v42 = vld [vmem:[#allocation8 + $0x3a4] ss:$16 sps:$4 sm:$0xff]   ;;  %v3637_v43 = vld [vmem:[#allocation8 + $0x3ac] ss:$16 sps:$4 sm:$0xff]  }
 0x165   :  { %2359 = vmatprep.subr.bf16.mxu0 %v3574_v44  ;;  %2523 = vmatprep.subr.bf16.mxu1 %v3577_v45  ;;  %v188_v44 = vrot.slane %v4173_v59, %v4153_v11  ;;  %v216_v45 = vrot.slane %v176_v40, %v4150_v10  ;;  %v3700_v40 = vld [vmem:[#allocation8 + $0x504] ss:$16 sps:$4 sm:$0xff]  }
 0x168   :  { %2360 = vmatpush1.bf16.msra.mxu0 %v3572_v46  ;;  %2524 = vmatpush1.bf16.msra.mxu1 %v3575_v47  ;;  %v3632_v46 = vld [vmem:[#allocation8 + $0x3a0] ss:$16 sps:$4 sm:$0xff]   ;;  %v3635_v47 = vld [vmem:[#allocation8 + $0x3a8] ss:$16 sps:$4 sm:$0xff]  }
 0x169   :  { %2361 = vmatprep.subr.bf16.mxu0 %v3580_v48  ;;  %2525 = vmatprep.subr.bf16.mxu1 %v3583_v49  ;;  %v3643_v48 = vld [vmem:[#allocation8 + $0x3cc] ss:$16 sps:$4 sm:$0xff]   ;;  %v228_v49 = vrot.slane %v188_v44, %v4150_v10 }
 0x16a   :  { %v3709_v44 = vld [vmem:[#allocation8 + $0x52c] ss:$16 sps:$4 sm:$0xff]  }
 0x16c   :  { %2362 = vmatpush1.bf16.msra.mxu0 %v3578_v50  ;;  %2526 = vmatpush1.bf16.msra.mxu1 %v3581_v51  ;;  %v633_v50 = vadd.f32 %v4167_v29, %v216_v45  ;;  %v3638_v51 = vld [vmem:[#allocation8 + $0x3c0] ss:$16 sps:$4 sm:$0xff]  }
 0x16d   :  { %2363 = vmatprep.subr.bf16.mxu0 %v3586_v52  ;;  %2527 = vmatprep.subr.bf16.mxu1 %v3589_v53  ;;  %v3641_v52 = vld [vmem:[#allocation8 + $0x3c8] ss:$16 sps:$4 sm:$0xff]   ;;  %v3646_v53 = vld [vmem:[#allocation8 + $0x3e4] ss:$16 sps:$4 sm:$0xff]   ;;  %v3704_v45 = vld [vmem:[#allocation8 + $0x520] ss:$16 sps:$4 sm:$0xff]  }
 0x170   :  { %2364 = vmatpush1.bf16.msra.mxu0 %v3584_v54  ;;  %2528 = vmatpush1.bf16.msra.mxu1 %v3587_v55  ;;  %v3649_v54 = vld [vmem:[#allocation8 + $0x3ec] ss:$16 sps:$4 sm:$0xff]  }
 0x171   :  { %2365 = vmatprep.subr.bf16.mxu0 %v3592_v56  ;;  %2529 = vmatprep.subr.bf16.mxu1 %v3595_v57  ;;  %v723_v56 = vmax.f32 %v633_v50, 0.0  ;;  %v3644_v57 = vld [vmem:[#allocation8 + $0x3e0] ss:$16 sps:$4 sm:$0xff]   ;;  %v3718_v50 = vld [vmem:[#allocation8 + $0x564] ss:$16 sps:$4 sm:$0xff]  }
 0x172   :  { %v4177_v3 = vpop.f32.mrb[4].mxu0 }
 0x173   :  { %v4181_v5 = vpop.f32.mrb[5].mxu0  ;;  %v714_v20 = vpop.f32.mrb[4].mxu1 }
 0x174   :  { %2366 = vmatpush1.bf16.msra.mxu0 %v3590_v60  ;;  %2530 = vmatpush1.bf16.msra.mxu1 %v3593_v61  ;;  %v677_v8 = vpop.f32.mrb[6].mxu0  ;;  %v4185_v23 = vadd.f32 %v714_v20, %v232_v16  ;;  %v716_v2 = vpop.f32.mrb[5].mxu1  ;;  %v676_v55 = vadd.f32 %v4181_v5, %v228_v49  ;;  %v3647_v60 = vld [vmem:[#allocation8 + $0x3e8] ss:$16 sps:$4 sm:$0xff]   ;;  %v3652_v61 = vld [vmem:[#allocation8 + $0x404] ss:$16 sps:$4 sm:$0xff]  }
 0x175   :  { %2367 = vmatprep.subr.bf16.mxu0 %v3598_v62  ;;  %2531 = vmatprep.subr.bf16.mxu1 %v3601_v63  ;;  %v678_v15 = vpop.f32.mrb[7].mxu0  ;;  %v4187_v24 = vadd.f32 %v716_v2, %v236_v17  ;;  %v718_v25 = vpop.f32.mrb[6].mxu1  ;;  %v3655_v62 = vld [vmem:[#allocation8 + $0x40c] ss:$16 sps:$4 sm:$0xff]   ;;  %v731_v63 = vpack.c.bf16 %v723_v56, %v723_v56  ;;  %v3656_v8 = vld [vmem:[#allocation8 + $0x420] ss:$16 sps:$4 sm:$0xff]   ;;  %v184_v56 = vrot.slane %v4173_v59, %v4150_v10 }
 0x176   :  { %v719_v26 = vpop.f32.mrb[7].mxu1  ;;  %v726_v29 = vmax.f32 %v676_v55, 0.0  ;;  %v3667_v15 = vld [vmem:[#allocation8 + $0x44c] ss:$16 sps:$4 sm:$0xff]   ;;  %v3662_v16 = vld [vmem:[#allocation8 + $0x440] ss:$16 sps:$4 sm:$0xff]  }
 0x177   :  { %v3665_v17 = vld [vmem:[#allocation8 + $0x448] ss:$16 sps:$4 sm:$0xff]   ;;  %v3668_v20 = vld [vmem:[#allocation8 + $0x460] ss:$16 sps:$4 sm:$0xff]   ;;  %v3679_v2 = vld [vmem:[#allocation8 + $0x48c] ss:$16 sps:$4 sm:$0xff]  }
 0x178   :  { %2368 = vmatpush1.bf16.msra.mxu0 %v3596_v6  ;;  %2532 = vmatpush1.bf16.msra.mxu1 %v3599_v7  ;;  %v3658_v6 = vld [vmem:[#allocation8 + $0x424] ss:$16 sps:$4 sm:$0xff]   ;;  %v3661_v7 = vld [vmem:[#allocation8 + $0x42c] ss:$16 sps:$4 sm:$0xff]   ;;  %v734_v5 = vpack.c.bf16 %v726_v29, %v726_v29  ;;  %v3674_v25 = vld [vmem:[#allocation8 + $0x480] ss:$16 sps:$4 sm:$0xff]   ;;  %v224_v29 = vrot.slane %v184_v56, %v4150_v10 }
 0x179   :  { %2369 = vmatprep.subr.bf16.mxu0 %v3604_v12  ;;  %2533 = vmatprep.subr.bf16.mxu1 %v3607_v13  ;;  %v3659_v12 = vld [vmem:[#allocation8 + $0x428] ss:$16 sps:$4 sm:$0xff]   ;;  %v3664_v13 = vld [vmem:[#allocation8 + $0x444] ss:$16 sps:$4 sm:$0xff]   ;;  %v3727_v55 = vld [vmem:[#allocation8 + $0x58c] ss:$16 sps:$4 sm:$0xff]  }
 0x17a   :  { %v3677_v26 = vld [vmem:[#allocation8 + $0x488] ss:$16 sps:$4 sm:$0xff]   ;;  %v674_v59 = vadd.f32 %v4177_v3, %v224_v29  ;;  %v3800_v56 = vld [vmem:[#allocation8 + $0x720] ss:$16 sps:$4 sm:$0xff]  }
 0x17b   :  { %v3713_v49 = vld [vmem:[#allocation8 + $0x548] ss:$16 sps:$4 sm:$0xff]  }
 0x17c   :  { %2370 = vmatpush1.bf16.msra.mxu0 %v3602_v18  ;;  %2534 = vmatpush1.bf16.msra.mxu1 %v3605_v19  ;;  %v3670_v18 = vld [vmem:[#allocation8 + $0x464] ss:$16 sps:$4 sm:$0xff]   ;;  %v3673_v19 = vld [vmem:[#allocation8 + $0x46c] ss:$16 sps:$4 sm:$0xff]   ;;  %v3809_v29 = vld [vmem:[#allocation8 + $0x748] ss:$16 sps:$4 sm:$0xff]  }
 0x17d   :  { %2371 = vmatprep.subr.bf16.mxu0 %v3610_v21  ;;  %2535 = vmatprep.subr.bf16.mxu1 %v3613_v22  ;;  %v3671_v21 = vld [vmem:[#allocation8 + $0x468] ss:$16 sps:$4 sm:$0xff]   ;;  %v3676_v22 = vld [vmem:[#allocation8 + $0x484] ss:$16 sps:$4 sm:$0xff]  }
 0x180   :  { %2372 = vmatpush1.bf16.msra.mxu0 %v3608_v27  ;;  %2536 = vmatpush1.bf16.msra.mxu1 %v3611_v28  ;;  %v3682_v27 = vld [vmem:[#allocation8 + $0x4a4] ss:$16 sps:$4 sm:$0xff]   ;;  %v3685_v28 = vld [vmem:[#allocation8 + $0x4ac] ss:$16 sps:$4 sm:$0xff]  }
 0x181   :  { %2373 = vmatprep.subr.bf16.mxu0 %v3616_v30  ;;  %2537 = vmatprep.subr.bf16.mxu1 %v3619_v31  ;;  %v3680_v30 = vld [vmem:[#allocation8 + $0x4a0] ss:$16 sps:$4 sm:$0xff]   ;;  %v3683_v31 = vld [vmem:[#allocation8 + $0x4a8] ss:$16 sps:$4 sm:$0xff]  }
 0x184   :  { %2374 = vmatpush1.bf16.msra.mxu0 %v3614_v32  ;;  %2538 = vmatpush1.bf16.msra.mxu1 %v3617_v33  ;;  %v3688_v32 = vld [vmem:[#allocation8 + $0x4c4] ss:$16 sps:$4 sm:$0xff]   ;;  %v3691_v33 = vld [vmem:[#allocation8 + $0x4cc] ss:$16 sps:$4 sm:$0xff]  }
 0x185   :  { %2375 = vmatprep.subr.bf16.mxu0 %v3622_v34  ;;  %2539 = vmatprep.subr.bf16.mxu1 %v3625_v35  ;;  %v3686_v34 = vld [vmem:[#allocation8 + $0x4c0] ss:$16 sps:$4 sm:$0xff]   ;;  %v3689_v35 = vld [vmem:[#allocation8 + $0x4c8] ss:$16 sps:$4 sm:$0xff]  }
 0x188   :  { %2376 = vmatpush1.bf16.msra.mxu0 %v3620_v36  ;;  %2540 = vmatpush1.bf16.msra.mxu1 %v3623_v37  ;;  %v3694_v36 = vld [vmem:[#allocation8 + $0x4e4] ss:$16 sps:$4 sm:$0xff]   ;;  %v3697_v37 = vld [vmem:[#allocation8 + $0x4ec] ss:$16 sps:$4 sm:$0xff]  }
 0x189   :  { %2377 = vmatprep.subr.bf16.mxu0 %v3628_v38  ;;  %2541 = vmatprep.subr.bf16.mxu1 %v3631_v39  ;;  %v3692_v38 = vld [vmem:[#allocation8 + $0x4e0] ss:$16 sps:$4 sm:$0xff]   ;;  %v3695_v39 = vld [vmem:[#allocation8 + $0x4e8] ss:$16 sps:$4 sm:$0xff]  }
 0x18c   :  { %2378 = vmatpush1.bf16.msra.mxu0 %v3626_v41  ;;  %2542 = vmatpush1.bf16.msra.mxu1 %v3629_v0  ;;  %v3703_v41 = vld [vmem:[#allocation8 + $0x50c] ss:$16 sps:$4 sm:$0xff]   ;;  %v3698_v0 = vld [vmem:[#allocation8 + $0x500] ss:$16 sps:$4 sm:$0xff]  }
 0x18d   :  { %2379 = vmatprep.subr.bf16.mxu0 %v3634_v42  ;;  %2543 = vmatprep.subr.bf16.mxu1 %v3637_v43  ;;  %v3701_v42 = vld [vmem:[#allocation8 + $0x508] ss:$16 sps:$4 sm:$0xff]   ;;  %v3706_v43 = vld [vmem:[#allocation8 + $0x524] ss:$16 sps:$4 sm:$0xff]  }
 0x190   :  { %2380 = vmatpush1.bf16.msra.mxu0 %v3632_v46  ;;  %2544 = vmatpush1.bf16.msra.mxu1 %v3635_v47  ;;  %v3707_v46 = vld [vmem:[#allocation8 + $0x528] ss:$16 sps:$4 sm:$0xff]   ;;  %v3712_v47 = vld [vmem:[#allocation8 + $0x544] ss:$16 sps:$4 sm:$0xff]  }
 0x191   :  { %2381 = vmatprep.subr.bf16.mxu0 %v3640_v9  ;;  %2545 = vmatprep.subr.bf16.mxu1 %v3643_v48  ;;  %v3715_v9 = vld [vmem:[#allocation8 + $0x54c] ss:$16 sps:$4 sm:$0xff]   ;;  %v3710_v48 = vld [vmem:[#allocation8 + $0x540] ss:$16 sps:$4 sm:$0xff]  }
 0x194   :  { %2382 = vmatpush1.bf16.msra.mxu0 %v3638_v51  ;;  %2546 = vmatpush1.bf16.msra.mxu1 %v3641_v52  ;;  %v3721_v51 = vld [vmem:[#allocation8 + $0x56c] ss:$16 sps:$4 sm:$0xff]   ;;  %v3716_v52 = vld [vmem:[#allocation8 + $0x560] ss:$16 sps:$4 sm:$0xff]  }
 0x195   :  { %2383 = vmatprep.subr.bf16.mxu0 %v3646_v53  ;;  %2547 = vmatprep.subr.bf16.mxu1 %v3649_v54  ;;  %v3719_v53 = vld [vmem:[#allocation8 + $0x568] ss:$16 sps:$4 sm:$0xff]   ;;  %v3724_v54 = vld [vmem:[#allocation8 + $0x584] ss:$16 sps:$4 sm:$0xff]  }
 0x198   :  { %2384 = vmatpush1.bf16.msra.mxu0 %v3644_v57  ;;  %2548 = vmatpush1.bf16.msra.mxu1 %v3647_v60  ;;  %v3722_v57 = vld [vmem:[#allocation8 + $0x580] ss:$16 sps:$4 sm:$0xff]   ;;  %v3725_v60 = vld [vmem:[#allocation8 + $0x588] ss:$16 sps:$4 sm:$0xff]  }
 0x199   :  { %2394 = vmatprep.subr.bf16.mxu0 %v3652_v61  ;;  %2558 = vmatprep.subr.bf16.mxu1 %v3655_v62  ;;  %v3730_v61 = vld [vmem:[#allocation8 + $0x5a4] ss:$16 sps:$4 sm:$0xff]   ;;  %v3733_v62 = vld [vmem:[#allocation8 + $0x5ac] ss:$16 sps:$4 sm:$0xff]  }
 0x19b   :  { %2386 = vmatmul.mubr.bf16.vlgmr.msra.gmra.mrb[8].mxu0 %v731_v63  ;;  %2550 = vmatmul.mubr.bf16.vlgmr.msra.gmra.mrb[8].mxu1 %v731_v63  ;;  %v3728_v63 = vld [vmem:[#allocation8 + $0x5a0] ss:$16 sps:$4 sm:$0xff]  }
 0x19c   :  { %2395 = vmatpush1.bf16.msra.mxu0 %v3650_v1  ;;  %2559 = vmatpush1.bf16.msra.mxu1 %v3653_v4  ;;  %v3731_v1 = vld [vmem:[#allocation8 + $0x5a8] ss:$16 sps:$4 sm:$0xff]   ;;  %v3736_v4 = vld [vmem:[#allocation8 + $0x5c4] ss:$16 sps:$4 sm:$0xff]  }
 0x19d   :  { %2396 = vmatprep.subr.bf16.mxu0 %v3658_v6  ;;  %2560 = vmatprep.subr.bf16.mxu1 %v3661_v7  ;;  %v3739_v6 = vld [vmem:[#allocation8 + $0x5cc] ss:$16 sps:$4 sm:$0xff]   ;;  %v3734_v7 = vld [vmem:[#allocation8 + $0x5c0] ss:$16 sps:$4 sm:$0xff]  }
 0x19e   :  { %2426 = vmatprep.mubr.bf16.mxu0 %v734_v5  ;;  %2590 = vmatprep.mubr.bf16.mxu1 %v734_v5  ;;  %v3737_v5 = vld [vmem:[#allocation8 + $0x5c8] ss:$16 sps:$4 sm:$0xff]  }
 0x1a0   :  { %2397 = vmatpush1.bf16.msra.mxu0 %v3656_v8  ;;  %2561 = vmatpush1.bf16.msra.mxu1 %v3659_v12  ;;  %v3742_v8 = vld [vmem:[#allocation8 + $0x5e4] ss:$16 sps:$4 sm:$0xff]   ;;  %v3745_v12 = vld [vmem:[#allocation8 + $0x5ec] ss:$16 sps:$4 sm:$0xff]  }
 0x1a1   :  { %2398 = vmatprep.subr.bf16.mxu0 %v3664_v13  ;;  %2562 = vmatprep.subr.bf16.mxu1 %v3667_v15  ;;  %v725_v13 = vmax.f32 %v674_v59, 0.0  ;;  %v3740_v15 = vld [vmem:[#allocation8 + $0x5e0] ss:$16 sps:$4 sm:$0xff]   ;;  %v3820_v59 = vld [vmem:[#allocation8 + $0x784] ss:$16 sps:$4 sm:$0xff]  }
 0x1a3   :  { %v733_v3 = vpack.c.bf16 %v725_v13, %v725_v13  ;;  %v3829_v13 = vld [vmem:[#allocation8 + $0x7ac] ss:$16 sps:$4 sm:$0xff]  }
 0x1a4   :  { %2399 = vmatpush1.bf16.msra.mxu0 %v3662_v16  ;;  %2563 = vmatpush1.bf16.msra.mxu1 %v3665_v17  ;;  %v3743_v16 = vld [vmem:[#allocation8 + $0x5e8] ss:$16 sps:$4 sm:$0xff]   ;;  %v3748_v17 = vld [vmem:[#allocation8 + $0x604] ss:$16 sps:$4 sm:$0xff]  }
 0x1a5   :  { %2400 = vmatprep.subr.bf16.mxu0 %v3670_v18  ;;  %2564 = vmatprep.subr.bf16.mxu1 %v3673_v19  ;;  %v3751_v18 = vld [vmem:[#allocation8 + $0x60c] ss:$16 sps:$4 sm:$0xff]   ;;  %v728_v19 = vmax.f32 %v4187_v24, 0.0 }
 0x1a6   :  { %v3763_v24 = vld [vmem:[#allocation8 + $0x64c] ss:$16 sps:$4 sm:$0xff]  }
 0x1a8   :  { %2401 = vmatpush1.bf16.msra.mxu0 %v3668_v20  ;;  %2565 = vmatpush1.bf16.msra.mxu1 %v3671_v21  ;;  %v3746_v20 = vld [vmem:[#allocation8 + $0x600] ss:$16 sps:$4 sm:$0xff]   ;;  %v3749_v21 = vld [vmem:[#allocation8 + $0x608] ss:$16 sps:$4 sm:$0xff]  }
 0x1a9   :  { %2402 = vmatprep.subr.bf16.mxu0 %v3676_v22  ;;  %2566 = vmatprep.subr.bf16.mxu1 %v3679_v2  ;;  %v3754_v22 = vld [vmem:[#allocation8 + $0x624] ss:$16 sps:$4 sm:$0xff]   ;;  %v3757_v2 = vld [vmem:[#allocation8 + $0x62c] ss:$16 sps:$4 sm:$0xff]  }
 0x1ac   :  { %2403 = vmatpush1.bf16.msra.mxu0 %v3674_v25  ;;  %2567 = vmatpush1.bf16.msra.mxu1 %v3677_v26  ;;  %v736_v25 = vpack.c.bf16 %v728_v19, %v728_v19  ;;  %v3752_v26 = vld [vmem:[#allocation8 + $0x620] ss:$16 sps:$4 sm:$0xff]  }
 0x1ad   :  { %2404 = vmatprep.subr.bf16.mxu0 %v3682_v27  ;;  %2568 = vmatprep.subr.bf16.mxu1 %v3685_v28  ;;  %v3755_v27 = vld [vmem:[#allocation8 + $0x628] ss:$16 sps:$4 sm:$0xff]   ;;  %v3760_v28 = vld [vmem:[#allocation8 + $0x644] ss:$16 sps:$4 sm:$0xff]   ;;  %v3830_v19 = vld [vmem:[#allocation8 + $0x7c0] ss:$16 sps:$4 sm:$0xff]  }
 0x1b0   :  { %2405 = vmatpush1.bf16.msra.mxu0 %v3680_v30  ;;  %2569 = vmatpush1.bf16.msra.mxu1 %v3683_v31  ;;  %v3758_v30 = vld [vmem:[#allocation8 + $0x640] ss:$16 sps:$4 sm:$0xff]   ;;  %v3761_v31 = vld [vmem:[#allocation8 + $0x648] ss:$16 sps:$4 sm:$0xff]  }
 0x1b1   :  { %2406 = vmatprep.subr.bf16.mxu0 %v3688_v32  ;;  %2570 = vmatprep.subr.bf16.mxu1 %v3691_v33  ;;  %v3766_v32 = vld [vmem:[#allocation8 + $0x664] ss:$16 sps:$4 sm:$0xff]   ;;  %v3769_v33 = vld [vmem:[#allocation8 + $0x66c] ss:$16 sps:$4 sm:$0xff]  }
 0x1b4   :  { %2407 = vmatpush1.bf16.msra.mxu0 %v3686_v34  ;;  %2571 = vmatpush1.bf16.msra.mxu1 %v3689_v35  ;;  %v3764_v34 = vld [vmem:[#allocation8 + $0x660] ss:$16 sps:$4 sm:$0xff]   ;;  %v3767_v35 = vld [vmem:[#allocation8 + $0x668] ss:$16 sps:$4 sm:$0xff]  }
 0x1b5   :  { %2408 = vmatprep.subr.bf16.mxu0 %v3694_v36  ;;  %2572 = vmatprep.subr.bf16.mxu1 %v3697_v37  ;;  %v3772_v36 = vld [vmem:[#allocation8 + $0x684] ss:$16 sps:$4 sm:$0xff]   ;;  %v3775_v37 = vld [vmem:[#allocation8 + $0x68c] ss:$16 sps:$4 sm:$0xff]  }
 0x1b8   :  { %2409 = vmatpush1.bf16.msra.mxu0 %v3692_v38  ;;  %2573 = vmatpush1.bf16.msra.mxu1 %v3695_v39  ;;  %v3770_v38 = vld [vmem:[#allocation8 + $0x680] ss:$16 sps:$4 sm:$0xff]   ;;  %v3773_v39 = vld [vmem:[#allocation8 + $0x688] ss:$16 sps:$4 sm:$0xff]  }
 0x1b9   :  { %2410 = vmatprep.subr.bf16.mxu0 %v3700_v40  ;;  %2574 = vmatprep.subr.bf16.mxu1 %v3703_v41  ;;  %v3778_v40 = vld [vmem:[#allocation8 + $0x6a4] ss:$16 sps:$4 sm:$0xff]   ;;  %v3781_v41 = vld [vmem:[#allocation8 + $0x6ac] ss:$16 sps:$4 sm:$0xff]  }
 0x1bc   :  { %2411 = vmatpush1.bf16.msra.mxu0 %v3698_v0  ;;  %2575 = vmatpush1.bf16.msra.mxu1 %v3701_v42  ;;  %v3776_v0 = vld [vmem:[#allocation8 + $0x6a0] ss:$16 sps:$4 sm:$0xff]   ;;  %v3779_v42 = vld [vmem:[#allocation8 + $0x6a8] ss:$16 sps:$4 sm:$0xff]  }
 0x1bd   :  { %2412 = vmatprep.subr.bf16.mxu0 %v3706_v43  ;;  %2576 = vmatprep.subr.bf16.mxu1 %v3709_v44  ;;  %v3784_v43 = vld [vmem:[#allocation8 + $0x6c4] ss:$16 sps:$4 sm:$0xff]   ;;  %v3787_v44 = vld [vmem:[#allocation8 + $0x6cc] ss:$16 sps:$4 sm:$0xff]  }
 0x1c0   :  { %2413 = vmatpush1.bf16.msra.mxu0 %v3704_v45  ;;  %2577 = vmatpush1.bf16.msra.mxu1 %v3707_v46  ;;  %v3782_v45 = vld [vmem:[#allocation8 + $0x6c0] ss:$16 sps:$4 sm:$0xff]   ;;  %v3785_v46 = vld [vmem:[#allocation8 + $0x6c8] ss:$16 sps:$4 sm:$0xff]  }
 0x1c1   :  { %2414 = vmatprep.subr.bf16.mxu0 %v3712_v47  ;;  %2578 = vmatprep.subr.bf16.mxu1 %v3715_v9  ;;  %v3790_v47 = vld [vmem:[#allocation8 + $0x6e4] ss:$16 sps:$4 sm:$0xff]   ;;  %v3793_v9 = vld [vmem:[#allocation8 + $0x6ec] ss:$16 sps:$4 sm:$0xff]  }
 0x1c4   :  { %2415 = vmatpush1.bf16.msra.mxu0 %v3710_v48  ;;  %2579 = vmatpush1.bf16.msra.mxu1 %v3713_v49  ;;  %v3788_v48 = vld [vmem:[#allocation8 + $0x6e0] ss:$16 sps:$4 sm:$0xff]   ;;  %v3791_v49 = vld [vmem:[#allocation8 + $0x6e8] ss:$16 sps:$4 sm:$0xff]  }
 0x1c5   :  { %2416 = vmatprep.subr.bf16.mxu0 %v3718_v50  ;;  %2580 = vmatprep.subr.bf16.mxu1 %v3721_v51  ;;  %v3796_v50 = vld [vmem:[#allocation8 + $0x704] ss:$16 sps:$4 sm:$0xff]   ;;  %v3799_v51 = vld [vmem:[#allocation8 + $0x70c] ss:$16 sps:$4 sm:$0xff]  }
 0x1c8   :  { %2417 = vmatpush1.bf16.msra.mxu0 %v3716_v52  ;;  %2581 = vmatpush1.bf16.msra.mxu1 %v3719_v53  ;;  %v3794_v52 = vld [vmem:[#allocation8 + $0x700] ss:$16 sps:$4 sm:$0xff]   ;;  %v3797_v53 = vld [vmem:[#allocation8 + $0x708] ss:$16 sps:$4 sm:$0xff]  }
 0x1c9   :  { %2418 = vmatprep.subr.bf16.mxu0 %v3724_v54  ;;  %2582 = vmatprep.subr.bf16.mxu1 %v3727_v55  ;;  %v3802_v54 = vld [vmem:[#allocation8 + $0x724] ss:$16 sps:$4 sm:$0xff]   ;;  %v3805_v55 = vld [vmem:[#allocation8 + $0x72c] ss:$16 sps:$4 sm:$0xff]  }
 0x1cc   :  { %2419 = vmatpush1.bf16.msra.mxu0 %v3722_v57  ;;  %2583 = vmatpush1.bf16.msra.mxu1 %v3725_v60  ;;  %v3803_v57 = vld [vmem:[#allocation8 + $0x728] ss:$16 sps:$4 sm:$0xff]   ;;  %v3808_v60 = vld [vmem:[#allocation8 + $0x744] ss:$16 sps:$4 sm:$0xff]  }
 0x1cd   :  { %2420 = vmatprep.subr.bf16.mxu0 %v3730_v61  ;;  %2584 = vmatprep.subr.bf16.mxu1 %v3733_v62  ;;  %v3811_v61 = vld [vmem:[#allocation8 + $0x74c] ss:$16 sps:$4 sm:$0xff]   ;;  %v3806_v62 = vld [vmem:[#allocation8 + $0x740] ss:$16 sps:$4 sm:$0xff]  }
 0x1d0   :  { %2421 = vmatpush1.bf16.msra.mxu0 %v3728_v63  ;;  %2585 = vmatpush1.bf16.msra.mxu1 %v3731_v1  ;;  %v3814_v63 = vld [vmem:[#allocation8 + $0x764] ss:$16 sps:$4 sm:$0xff]   ;;  %v3817_v1 = vld [vmem:[#allocation8 + $0x76c] ss:$16 sps:$4 sm:$0xff]  }
 0x1d1   :  { %2422 = vmatprep.subr.bf16.mxu0 %v3736_v4  ;;  %2586 = vmatprep.subr.bf16.mxu1 %v3739_v6  ;;  %v3812_v4 = vld [vmem:[#allocation8 + $0x760] ss:$16 sps:$4 sm:$0xff]   ;;  %v3815_v6 = vld [vmem:[#allocation8 + $0x768] ss:$16 sps:$4 sm:$0xff]  }
 0x1d4   :  { %2423 = vmatpush1.bf16.msra.mxu0 %v3734_v7  ;;  %2587 = vmatpush1.bf16.msra.mxu1 %v3737_v5  ;;  %v3823_v7 = vld [vmem:[#allocation8 + $0x78c] ss:$16 sps:$4 sm:$0xff]   ;;  %v3818_v5 = vld [vmem:[#allocation8 + $0x780] ss:$16 sps:$4 sm:$0xff]  }
 0x1d5   :  { %2424 = vmatprep.subr.bf16.mxu0 %v3742_v8  ;;  %2588 = vmatprep.subr.bf16.mxu1 %v3745_v12  ;;  %v3821_v8 = vld [vmem:[#allocation8 + $0x788] ss:$16 sps:$4 sm:$0xff]   ;;  %v3826_v12 = vld [vmem:[#allocation8 + $0x7a4] ss:$16 sps:$4 sm:$0xff]  }
 0x1d8   :  { %2425 = vmatpush1.bf16.msra.mxu0 %v3740_v15  ;;  %2589 = vmatpush1.bf16.msra.mxu1 %v3743_v16  ;;  %v3824_v15 = vld [vmem:[#allocation8 + $0x7a0] ss:$16 sps:$4 sm:$0xff]   ;;  %v3827_v16 = vld [vmem:[#allocation8 + $0x7a8] ss:$16 sps:$4 sm:$0xff]  }
 0x1d9   :  { %2435 = vmatprep.subr.bf16.mxu0 %v3748_v17  ;;  %2599 = vmatprep.subr.bf16.mxu1 %v3751_v18  ;;  %v3832_v17 = vld [vmem:[#allocation8 + $0x7c4] ss:$16 sps:$4 sm:$0xff]   ;;  %v3835_v18 = vld [vmem:[#allocation8 + $0x7cc] ss:$16 sps:$4 sm:$0xff]  }
 0x1db   :  { %2427 = vmatmul.mubr.bf16.vlgmr.msra.gmra.mrb[8].mxu0 %v733_v3  ;;  %2591 = vmatmul.mubr.bf16.vlgmr.msra.gmra.mrb[8].mxu1 %v733_v3  ;;  %v3833_v3 = vld [vmem:[#allocation8 + $0x7c8] ss:$16 sps:$4 sm:$0xff]  }
 0x1dc   :  { %2436 = vmatpush1.bf16.msra.mxu0 %v3746_v20  ;;  %2600 = vmatpush1.bf16.msra.mxu1 %v3749_v21  ;;  %v3838_v20 = vld [vmem:[#allocation8 + $0x7e4] ss:$16 sps:$4 sm:$0xff]   ;;  %v3841_v21 = vld [vmem:[#allocation8 + $0x7ec] ss:$16 sps:$4 sm:$0xff]  }
 0x1dd   :  { %2437 = vmatprep.subr.bf16.mxu0 %v3754_v22  ;;  %2601 = vmatprep.subr.bf16.mxu1 %v3757_v2  ;;  %v3836_v22 = vld [vmem:[#allocation8 + $0x7e0] ss:$16 sps:$4 sm:$0xff]   ;;  %v3839_v2 = vld [vmem:[#allocation8 + $0x7e8] ss:$16 sps:$4 sm:$0xff]  }
 0x1de   :  { %2467 = vmatprep.mubr.bf16.mxu0 %v736_v25  ;;  %2631 = vmatprep.mubr.bf16.mxu1 %v736_v25  ;;  %v727_v25 = vmax.f32 %v4185_v23, 0.0  ;;  %v3850_v23 = vld [vmem:[#allocation10 + $0x50] sm:$0xff]  }
 0x1e0   :  { %2438 = vmatpush1.bf16.msra.mxu0 %v3752_v26  ;;  %2602 = vmatpush1.bf16.msra.mxu1 %v3755_v27  ;;  %v3842_v26 = vld [vmem:[#allocation10 + $0x40] sm:$0xff]  }
 0x1e1   :  { %2439 = vmatprep.subr.bf16.mxu0 %v3760_v28  ;;  %2603 = vmatprep.subr.bf16.mxu1 %v3763_v24  ;;  %v3843_v27 = vld [vmem:[#allocation10 + $0xc0] sm:$0xff]  }
 0x1e2   :  { %v3844_v28 = vld [vmem:[#allocation10] sm:$0xff]  }
 0x1e3   :  { %v3845_v24 = vld [vmem:[#allocation10 + $0x80] sm:$0xff]  }
 0x1e4   :  { %2440 = vmatpush1.bf16.msra.mxu0 %v3758_v30  ;;  %2604 = vmatpush1.bf16.msra.mxu1 %v3761_v31  ;;  %v735_v30 = vpack.c.bf16 %v727_v25, %v727_v25  ;;  %v3846_v31 = vld [vmem:[#allocation10 + $0x48] sm:$0xff]  }
 0x1e5   :  { %2441 = vmatprep.subr.bf16.mxu0 %v3766_v32  ;;  %2605 = vmatprep.subr.bf16.mxu1 %v3769_v33  ;;  %v3847_v32 = vld [vmem:[#allocation10 + $0xc8] sm:$0xff]  }
 0x1e6   :  { %v3848_v33 = vld [vmem:[#allocation10 + $0x8] sm:$0xff]  }
 0x1e8   :  { %2442 = vmatpush1.bf16.msra.mxu0 %v3764_v34  ;;  %2606 = vmatpush1.bf16.msra.mxu1 %v3767_v35  ;;  %v3849_v34 = vld [vmem:[#allocation10 + $0x88] sm:$0xff]   ;;  %v3851_v35 = vld [vmem:[#allocation10 + $0xd0] sm:$0xff]  }
 0x1e9   :  { %2443 = vmatprep.subr.bf16.mxu0 %v3772_v36  ;;  %2607 = vmatprep.subr.bf16.mxu1 %v3775_v37  ;;  %v3852_v36 = vld [vmem:[#allocation10 + $0x10] sm:$0xff]  }
 0x1ea   :  { %v3853_v37 = vld [vmem:[#allocation10 + $0x90] sm:$0xff]  }
 0x1ec   :  { %2444 = vmatpush1.bf16.msra.mxu0 %v3770_v38  ;;  %2608 = vmatpush1.bf16.msra.mxu1 %v3773_v39  ;;  %v3854_v38 = vld [vmem:[#allocation10 + $0x58] sm:$0xff]  }
 0x1ed   :  { %2445 = vmatprep.subr.bf16.mxu0 %v3778_v40  ;;  %2609 = vmatprep.subr.bf16.mxu1 %v3781_v41  ;;  %v3855_v39 = vld [vmem:[#allocation10 + $0xd8] sm:$0xff]  }
 0x1ee   :  { %v3856_v40 = vld [vmem:[#allocation10 + $0x18] sm:$0xff]  }
 0x1ef   :  { %v3857_v41 = vld [vmem:[#allocation10 + $0x98] sm:$0xff]  }
 0x1f0   :  { %2446 = vmatpush1.bf16.msra.mxu0 %v3776_v0  ;;  %2610 = vmatpush1.bf16.msra.mxu1 %v3779_v42  ;;  %v3858_v0 = vld [vmem:[#allocation10 + $0x60] sm:$0xff]  }
 0x1f1   :  { %2447 = vmatprep.subr.bf16.mxu0 %v3784_v43  ;;  %2611 = vmatprep.subr.bf16.mxu1 %v3787_v44  ;;  %v3859_v42 = vld [vmem:[#allocation10 + $0xe0] sm:$0xff]  }
 0x1f2   :  { %v3860_v43 = vld [vmem:[#allocation10 + $0x20] sm:$0xff]  }
 0x1f3   :  { %v3861_v44 = vld [vmem:[#allocation10 + $0xa0] sm:$0xff]  }
 0x1f4   :  { %2448 = vmatpush1.bf16.msra.mxu0 %v3782_v45  ;;  %2612 = vmatpush1.bf16.msra.mxu1 %v3785_v46  ;;  %v3862_v45 = vld [vmem:[#allocation10 + $0x68] sm:$0xff]  }
 0x1f5   :  { %2449 = vmatprep.subr.bf16.mxu0 %v3790_v47  ;;  %2613 = vmatprep.subr.bf16.mxu1 %v3793_v9  ;;  %v3863_v46 = vld [vmem:[#allocation10 + $0xe8] sm:$0xff]  }
 0x1f6   :  { %v3864_v47 = vld [vmem:[#allocation10 + $0x28] sm:$0xff]  }
 0x1f7   :  { %v3865_v9 = vld [vmem:[#allocation10 + $0xa8] sm:$0xff]  }
 0x1f8   :  { %2450 = vmatpush1.bf16.msra.mxu0 %v3788_v48  ;;  %2614 = vmatpush1.bf16.msra.mxu1 %v3791_v49  ;;  %v3866_v48 = vld [vmem:[#allocation10 + $0x70] sm:$0xff]  }
 0x1f9   :  { %2451 = vmatprep.subr.bf16.mxu0 %v3796_v50  ;;  %2615 = vmatprep.subr.bf16.mxu1 %v3799_v51  ;;  %v3867_v49 = vld [vmem:[#allocation10 + $0xf0] sm:$0xff]  }
 0x1fa   :  { %v3868_v50 = vld [vmem:[#allocation10 + $0x30] sm:$0xff]  }
 0x1fb   :  { %v3869_v51 = vld [vmem:[#allocation10 + $0xb0] sm:$0xff]  }
 0x1fc   :  { %2452 = vmatpush1.bf16.msra.mxu0 %v3794_v52  ;;  %2616 = vmatpush1.bf16.msra.mxu1 %v3797_v53  ;;  %v3870_v52 = vld [vmem:[#allocation10 + $0x78] sm:$0xff]  }
 0x1fd   :  { %2453 = vmatprep.subr.bf16.mxu0 %v3802_v54  ;;  %2617 = vmatprep.subr.bf16.mxu1 %v3805_v55  ;;  %v3871_v53 = vld [vmem:[#allocation10 + $0xf8] sm:$0xff]  }
 0x1fe   :  { %v3872_v54 = vld [vmem:[#allocation10 + $0x38] sm:$0xff]  }
 0x1ff   :  { %v3873_v55 = vld [vmem:[#allocation10 + $0xb8] sm:$0xff]  }
 0x200   :  { %2454 = vmatpush1.bf16.msra.mxu0 %v3800_v56  ;;  %2618 = vmatpush1.bf16.msra.mxu1 %v3803_v57  ;;  %v993_v56 = vld [vmem:[%s4237_s4] sm:$0xf] }
 0x201   :  { %2455 = vmatprep.subr.bf16.mxu0 %v3808_v60  ;;  %2619 = vmatprep.subr.bf16.mxu1 %v3811_v61  ;;  %v994_v57 = vunpack.c.l.bf16 %v993_v56 }
 0x203   :  { %v999_v60 = vrot.slane %v994_v57, %v4150_v10  ;;  %v1007_v61 = vrot.slane %v994_v57, %v4170_v58 }
 0x204   :  { %2456 = vmatpush1.bf16.msra.mxu0 %v3806_v62  ;;  %2620 = vmatpush1.bf16.msra.mxu1 %v3809_v29  ;;  %v1003_v62 = vrot.slane %v994_v57, %v4153_v11  ;;  %v1011_v29 = vrot.slane %v994_v57, %v4160_v14 }
 0x205   :  { %2457 = vmatprep.subr.bf16.mxu0 %v3814_v63  ;;  %2621 = vmatprep.subr.bf16.mxu1 %v3817_v1  ;;  %v1019_v63 = vrot.slane %v999_v60, %v4150_v10  ;;  %v1027_v1 = vrot.slane %v1007_v61, %v4150_v10 }
 0x208   :  { %2458 = vmatpush1.bf16.msra.mxu0 %v3812_v4  ;;  %2622 = vmatpush1.bf16.msra.mxu1 %v3815_v6  ;;  %v1023_v4 = vrot.slane %v1003_v62, %v4150_v10  ;;  %v1031_v6 = vrot.slane %v1011_v29, %v4150_v10 }
 0x209   :  { %2459 = vmatprep.subr.bf16.mxu0 %v3820_v59  ;;  %2623 = vmatprep.subr.bf16.mxu1 %v3823_v7 }
 0x20c   :  { %2460 = vmatpush1.bf16.msra.mxu0 %v3818_v5  ;;  %2624 = vmatpush1.bf16.msra.mxu1 %v3821_v8 }
 0x20d   :  { %2461 = vmatprep.subr.bf16.mxu0 %v3826_v12  ;;  %2625 = vmatprep.subr.bf16.mxu1 %v3829_v13 }
 0x210   :  { %2462 = vmatpush1.bf16.msra.mxu0 %v3824_v15  ;;  %2626 = vmatpush1.bf16.msra.mxu1 %v3827_v16 }
 0x211   :  { %2463 = vmatprep.subr.bf16.mxu0 %v3832_v17  ;;  %2627 = vmatprep.subr.bf16.mxu1 %v3835_v18 }
 0x214   :  { %2464 = vmatpush1.bf16.msra.mxu0 %v3830_v19  ;;  %2628 = vmatpush1.bf16.msra.mxu1 %v3833_v3 }
 0x215   :  { %2465 = vmatprep.subr.bf16.mxu0 %v3838_v20  ;;  %2629 = vmatprep.subr.bf16.mxu1 %v3841_v21 }
 0x218   :  { %2466 = vmatpush1.bf16.msra.mxu0 %v3836_v22  ;;  %2630 = vmatpush1.bf16.msra.mxu1 %v3839_v2 }
 0x219   :  { %3373 = vmatprep.subr.bf16.mxu0 %v3842_v26  ;;  %3395 = vmatprep.subr.bf16.mxu1 %v3843_v27  ;;  %v2712_v26 = vld [vmem:[%s4239_s6] sm:$0x1]  ;;  %s4026_s6 = smov [#allocation11]  }
 0x21a   :  { %v2713_v27 = vunpack.c.l.bf16 %v2712_v26  ;;  %s3008_s25 = sshll.u32 %s4026_s6, 4  ;;  %s3009_s25 = int_to_ptr.vmem [resolvable:$true] %s3008_s25 }
 0x21b   :  { %2468 = vmatmul.mubr.bf16.vlgmr.msra.gmra.mrb[8].mxu0 %v735_v30  ;;  %2632 = vmatmul.mubr.bf16.vlgmr.msra.gmra.mrb[8].mxu1 %v735_v30  ;;  %s3984_s26 = scalar_lea.vmem %s3009_s25, 128  ;;  %p3989_p13 = scmp.lt.s32.totalorder %s3009_s25, %s3009_s25 }
 0x21c   :  { %3374 = vmatpush3.bf16.msra.mxu0 %v3844_v28  ;;  %3396 = vmatpush3.bf16.msra.mxu1 %v3845_v24  ;;  %v2717_v30 = vrot.slane %v2713_v27, %v4150_v10  ;;  %p3985_p12 = scmp.ne.s32.totalorder %s3009_s25, %s3984_s26  ;;  %p3990_p0 = scmp.lt.s32.totalorder %s3984_s26, %s3984_s26 }
 0x21d   :  { %3375 = vmatprep.subr.bf16.mxu0 %v3846_v31  ;;  %3397 = vmatprep.subr.bf16.mxu1 %v3847_v32 }
 0x21e   :  { %p3991_p1 = por %p3990_p0, %p3989_p13 }
 0x220   :  { %3376 = vmatpush3.bf16.msra.mxu0 %v3848_v33  ;;  %3398 = vmatpush3.bf16.msra.mxu1 %v3849_v34  ;;  %p3992_p2 = pnand %p3991_p1, %p3985_p12 }
 0x221   :  { %3377 = vmatprep.subr.bf16.mxu0 %v3850_v23  ;;  %3399 = vmatprep.subr.bf16.mxu1 %v3851_v35 }
 0x224   :  { %3378 = vmatpush3.bf16.msra.mxu0 %v3852_v36  ;;  %3400 = vmatpush3.bf16.msra.mxu1 %v3853_v37 }
 0x225   :  { %3379 = vmatprep.subr.bf16.mxu0 %v3854_v38  ;;  %3401 = vmatprep.subr.bf16.mxu1 %v3855_v39 }
 0x228   :  { %3380 = vmatpush3.bf16.msra.mxu0 %v3856_v40  ;;  %3402 = vmatpush3.bf16.msra.mxu1 %v3857_v41  ;;  %v2991_v40 = vld [vmem:[%s4240_s7] sm:$0xff] }
 0x229   :  { %3381 = vmatprep.subr.bf16.mxu0 %v3858_v0  ;;  %3403 = vmatprep.subr.bf16.mxu1 %v3859_v42 }
 0x22c   :  { %3382 = vmatpush3.bf16.msra.mxu0 %v3860_v43  ;;  %3404 = vmatpush3.bf16.msra.mxu1 %v3861_v44 }
 0x22d   :  { %3383 = vmatprep.subr.bf16.mxu0 %v3862_v45  ;;  %3405 = vmatprep.subr.bf16.mxu1 %v3863_v46 }
 0x230   :  { %3384 = vmatpush3.bf16.msra.mxu0 %v3864_v47  ;;  %3406 = vmatpush3.bf16.msra.mxu1 %v3865_v9 }
 0x231   :  { %3385 = vmatprep.subr.bf16.mxu0 %v3866_v48  ;;  %3407 = vmatprep.subr.bf16.mxu1 %v3867_v49 }
 0x234   :  { %3386 = vmatpush3.bf16.msra.mxu0 %v3868_v50  ;;  %3408 = vmatpush3.bf16.msra.mxu1 %v3869_v51 }
 0x235   :  { %3387 = vmatprep.subr.bf16.mxu0 %v3870_v52  ;;  %3409 = vmatprep.subr.bf16.mxu1 %v3871_v53 }
 0x238   :  { %3388 = vmatpush3.bf16.msra.mxu0 %v3872_v54  ;;  %3410 = vmatpush3.bf16.msra.mxu1 %v3873_v55 }
 0x2ee   :  { %v2469_v59 = vpop.f32.mrb[8].mxu0  ;;  %v2633_v7 = vpop.f32.mrb[8].mxu1 }
 0x2ef   :  { %v3417_v5 = vadd.f32 %v2469_v59, %v1019_v63  ;;  %v3419_v8 = vadd.f32 %v2633_v7, %v1027_v1  ;;  %v2471_v12 = vpop.f32.mrb[9].mxu0  ;;  %v2635_v13 = vpop.f32.mrb[9].mxu1 }
 0x2f0   :  { %v3418_v15 = vadd.f32 %v2471_v12, %v1023_v4  ;;  %v3420_v58 = vadd.f32 %v2635_v13, %v1031_v6  ;;  %v2473_v16 = vpop.f32.mrb[10].mxu0  ;;  %v2637_v11 = vpop.f32.mrb[10].mxu1 }
 0x2f1   :  { %v2640_v17 = vmax.f32 %v3417_v5, 0.0  ;;  %v2642_v14 = vmax.f32 %v3419_v8, 0.0  ;;  %v2474_v18 = vpop.f32.mrb[11].mxu0  ;;  %v2638_v19 = vpop.f32.mrb[11].mxu1 }
 0x2f2   :  { %v2641_v3 = vmax.f32 %v3418_v15, 0.0  ;;  %v2643_v20 = vmax.f32 %v3420_v58, 0.0 }
 0x2f3   :  { %v2644_v2 = vpack.c.bf16 %v2640_v17, %v2640_v17  ;;  %v2646_v25 = vpack.c.bf16 %v2642_v14, %v2642_v14 }
 0x2f4   :  { %v2645_v21 = vpack.c.bf16 %v2641_v3, %v2641_v3  ;;  %v2647_v22 = vpack.c.bf16 %v2643_v20, %v2643_v20 }
 0x2f6   :  { %2942 = vmatprep.mubr.bf16.mxu0 %v2645_v21  ;;  %2982 = vmatprep.mubr.bf16.mxu1 %v2647_v22 }
 0x2f7   :  { %2943 = vmatmul.mubr.bf16.vlgmr.msra.gmra.mrb[12].mxu0 %v2644_v2  ;;  %2983 = vmatmul.mubr.bf16.vlgmr.msra.gmra.mrb[12].mxu1 %v2646_v25 }
 0x3ca   :  { %v3389_v28 = vpop.f32.mrb[12].mxu0  ;;  %v3411_v24 = vpop.f32.mrb[12].mxu1 }
 0x3cb   :  { %v3390_v31 = vpop.f32.mrb[13].mxu0  ;;  %v3412_v32 = vpop.f32.mrb[13].mxu1 }
 0x3cc   :  { %v3391_v33 = vadd.f32 %v3390_v31, %v3389_v28  ;;  %v3413_v34 = vadd.f32 %v3412_v32, %v3411_v24  ;;  %v3392_v23 = vpop.f32.mrb[14].mxu0  ;;  %v3414_v35 = vpop.f32.mrb[14].mxu1 }
 0x3cd   :  { %v3393_v36 = vpop.f32.mrb[15].mxu0  ;;  %v3415_v37 = vpop.f32.mrb[15].mxu1 }
 0x3ce   :  { %v2945_v38 = vadd.f32 %v3391_v33, %v2717_v30 }
 0x3d0   :  { %v2985_v39 = vadd.f32 %v3413_v34, %v2945_v38 }
 0x3d2   :  { %v2990_v41 = vmax.f32 %v2985_v39, 0.0 }
 0x3d4   :  { %v2992_v0 = vadd.f32 %v2991_v40, %v2990_v41 }
 0x3d6   :  { %v3371_v42 = vadd.f32 1.0, %v2992_v0 }
 0x3d8   :  { %v2994_v43 = vmul.f32 1.5, %v3371_v42 }
 0x3da   :  { %v3372_v44 = vadd.f32 -0.5, %v2994_v43 }
 0x3dc   :  { %v2996_v10 = vceil.f32 %v3372_v44 }
 0x3de   :  { %v2997_v45 = vmax.f32 %v2996_v10, 0.0 }
 0x3e0   :  { %v2998_v46 = vmin.f32 %v2997_v45, 3.0 }
 0x3e2   :  { %v2999_v47 = vmul.f32 0.6666667, %v2998_v46 }
 0x3e4   :  { %v3000_v9 = vadd.f32 -1.0, %v2999_v47 }
 0x3e6   :  { %3001 = vst [vmem:[#allocation11] sm:$0xff] %v3000_v9 }
 0x3e7   :  { %3995 = shalt.err (!%p3992_p2)
}
 0x3e8   :  { %s3996_s29 = scalar_lea.hbm %s4241_s8, 128 }
 0x3e9   :  { %p3997_p3 = scmp.ne.s32.totalorder %s4241_s8, %s3996_s29  ;;  %p4000_p4 = scmp.lt.u32.totalorder %s3996_s29, %s4241_s8 }
 0x3eb   :  { %p4002_p5 = pnand %p4000_p4, %p3997_p3 }
 0x3ed   :  { %4005 = shalt.err (!%p4002_p5)
}
 0x3ee   :  { %3011 = dma.vmem_to_hbm [thread:$0]  %s3009_s25, 128, %s4241_s8, [#allocation4]  }
 0x3ef   :  { %4012 = dma.done.wait [#allocation4], 128  }
 0x3f0   :  { %4013 = vsyncadd [#allocation4], 4294967168 }
 0x3f1   :  { %3015 = vsyncpa [#allocation3], 1 }
 0x3f2   :  { %3016 = vsyncpa [#allocation6], 1 }
 0x3f3   :  { %3017 = vsyncpa [#allocation9], 1 }
 0x3f4   :  { %3018 = vsyncpa [#allocation4], 1 }

</bundles_post_ra>
